<compile_context>
chip_gen: v7x
topology: tpu7x:2x2x1
jax: 0.10.0
libtpu: 0.0.40
codegen_flags: <defaults>
</compile_context>

<pallas_src>
import functools

import jax
import jax.numpy as jnp
from jax import lax
from jax.experimental import pallas as pl
from jax.experimental.pallas import tpu as pltpu


def bottleneck_kernel(xp_ref, w1_ref, b1_ref, w2_ref, b2_ref, w3_ref, b3_ref,
                      o_ref):
    """One (batch, row-tile) grid step: conv1x1+bn+relu, conv3x3+bn+relu,
    conv1x1+bn, residual add, relu -- all fused."""
    t = pl.program_id(1)

    _, TH, W, Cout = o_ref.shape
    Cin = xp_ref.shape[3]
    Cw = w1_ref.shape[1]
    H = xp_ref.shape[1] - 2               # un-padded image height
    M_ext = (TH + 2) * W                  # haloed slab rows, flattened
    M_out = TH * W

    # Haloed input slab: padded rows [t*TH, t*TH + TH + 2).  The whole padded
    # image stays resident in VMEM across the row tiles of one batch element,
    # so this is a vreg-granular dynamic slice along a major dim (no relayout).
    r0 = pl.multiple_of(t * TH, TH)
    x_ext = xp_ref[0, pl.ds(r0, TH + 2), :, :]             # (TH+2, W, Cin)

    # ---- conv1 (1x1) + bn1 (scale folded into w1) + relu -------------------
    h1 = jnp.dot(x_ext.reshape(M_ext, Cin).astype(jnp.bfloat16), w1_ref[...],
                 preferred_element_type=jnp.float32)
    h1 = jnp.maximum(h1 + b1_ref[...], 0.0)                # (M_ext, Cw) f32

    # conv2 needs h1 zero-padded at the *image* border; slab rows coming from
    # the zero-padded x rows hold relu(b1) != 0, so force them to zero.  Use a
    # cheap (TH+2,1,1) row iota (no full-slab int32 iota, no modulo).
    h1 = h1.reshape(TH + 2, W, Cw)
    row = r0 - 1 + lax.broadcasted_iota(jnp.int32, (TH + 2, 1, 1), 0)
    h1 = jnp.where((row >= 0) & (row < H), h1, 0.0)

    # ---- conv2 (3x3, pad=1, stride=1) + bn2 + relu --------------------------
    # dx shifts: two sublane rolls of the flattened slab (XLU, f32) + a (1,W,1)
    # edge-column mask; taps materialized in bf16 (MXU input dtype).
    F0 = h1.reshape(M_ext, Cw)
    Fp = pltpu.roll(F0, shift=1, axis=0)                    # reads col - 1
    Fm = pltpu.roll(F0, shift=M_ext - 1, axis=0)            # reads col + 1
    wcol = lax.broadcasted_iota(jnp.int32, (1, W, 1), 1)
    zero = jnp.bfloat16(0)
    t_m1 = jnp.where(wcol == 0, zero,
                     Fp.astype(jnp.bfloat16).reshape(TH + 2, W, Cw))
    t_00 = h1.astype(jnp.bfloat16)
    t_p1 = jnp.where(wcol == W - 1, zero,
                     Fm.astype(jnp.bfloat16).reshape(TH + 2, W, Cw))
    taps = (t_m1, t_00, t_p1)                               # kx = 0, 1, 2

    # dy shifts are static slices along the leading (non-tiled) dim; the dx
    # (and optionally dy) taps are fused along K so the MXU sees deep matmuls.
    if len(w2_ref.shape) == 2:
        # Full im2col along K: ONE matmul with K = 9*Cw (narrow-width configs).
        pieces = [taps[kx][ky:ky + TH] for ky in range(3) for kx in range(3)]
        lhs = jnp.concatenate(pieces, axis=-1).reshape(M_out, 9 * Cw)
        acc = jnp.dot(lhs, w2_ref[...], preferred_element_type=jnp.float32)
    else:
        # Per-ky fusion: THREE matmuls with K = 3*Cw, w2_ref is (3, 3*Cw, Cw).
        G = jnp.concatenate(taps, axis=-1)                  # (TH+2, W, 3*Cw)
        acc = jnp.dot(G[0:TH].reshape(M_out, 3 * Cw), w2_ref[0],
                      preferred_element_type=jnp.float32)
        for ky in (1, 2):
            acc = acc + jnp.dot(G[ky:ky + TH].reshape(M_out, 3 * Cw),
                                w2_ref[ky], preferred_element_type=jnp.float32)
    h2 = jnp.maximum(acc + b2_ref[...], 0.0)                # (M_out, Cw) f32

    # ---- conv3 (1x1) + bn3, residual add, relu ------------------------------
    h3 = jnp.dot(h2.astype(jnp.bfloat16), w3_ref[...],
                 preferred_element_type=jnp.float32) + b3_ref[...]
    resid = x_ext[1:1 + TH].reshape(M_out, Cin).astype(jnp.float32)
    out = jnp.maximum(h3 + resid, 0.0)
    o_ref[0] = out.reshape(TH, W, Cout).astype(o_ref.dtype)


def fold_bn(gamma, beta, mean, var, eps=1e-5):
    s = gamma / jnp.sqrt(var + eps)
    return s, beta - mean * s


def _pick_tile_h(H, W):
    """Largest divisor of H such that tile_h*W <= 2048 output rows per step."""
    best = 1
    for d in range(1, H + 1):
        if H % d == 0 and d * W <= 2048:
            best = d
    return best


def _vmem_limit_bytes(H, W, Cin, Cw, Cout, tile_h, x_bytes, out_bytes):
    """Derive a per-generation VMEM limit from the actual block/activation
    footprint (v7x: 64 MiB physical; v5e/v6e: 128 MiB)."""
    m_ext = (tile_h + 2) * W
    m_out = tile_h * W
    blocks = 2 * ((H + 2) * W * Cin * x_bytes          # resident input image
                  + tile_h * W * Cout * out_bytes)      # output row tile
    weights = 2 * 2 * (Cin * Cw + 9 * Cw * Cw + Cw * Cout + 2 * Cw + Cout)
    acts = (m_ext * Cin * 4                            # x slab (f32 worst case)
            + m_ext * Cw * (4 + 3 * 2)                 # h1 f32 + 3 bf16 taps
            + m_out * 9 * Cw * 2                       # conv2 im2col LHS (bf16)
            + m_out * Cw * 8                           # acc + h2 (f32)
            + m_out * Cout * 8)                        # h3 + out (f32)
    need = blocks + weights + 2 * acts + (4 << 20)
    try:
        cap = pltpu.get_tpu_info().vmem_capacity_bytes
    except Exception:                                   # conservative fallback
        cap = 64 << 20
    return int(min(max(need, 32 << 20), cap - (4 << 20)))


@functools.partial(jax.jit, static_argnames=("tile_h", "out_dtype"))
def bottleneck_pallas(x_nhwc, w1, bn1, w2, bn2, w3, bn3, *, tile_h=None,
                      out_dtype=jnp.float32):
    N, H, W, Cin = x_nhwc.shape
    Cw = w1.shape[1]
    Cout = w3.shape[1]
    assert Cin == Cout, "identity residual requires inplanes == planes*expansion"
    if tile_h is None:
        tile_h = _pick_tile_h(H, W)
    assert H % tile_h == 0, "tile_h must divide H"
    n_tiles = H // tile_h

    # Fold BN scale into the conv weights (bias stays separate); bf16 weights
    # feed the MXU, biases / accumulation stay f32.
    s1, b1 = fold_bn(*bn1)
    s2, b2 = fold_bn(*bn2)
    s3, b3 = fold_bn(*bn3)
    w1s = (w1 * s1[None, :]).astype(jnp.bfloat16)               # (Cin, Cw)
    w3s = (w3 * s3[None, :]).astype(jnp.bfloat16)               # (Cw, Cout)
    w2f = w2 * s2[None, None, None, :]                          # (3,3,Cw,Cw) HWIO
    # Pre-reshape w2 on the host into the exact in-kernel matmul layout.
    if 3 * Cw < 256:
        w2s = w2f.reshape(9 * Cw, Cw).astype(jnp.bfloat16)      # full im2col K
        w2_spec = pl.BlockSpec((9 * Cw, Cw), lambda n, t: (0, 0))
    else:
        w2s = w2f.reshape(3, 3 * Cw, Cw).astype(jnp.bfloat16)   # per-ky K
        w2_spec = pl.BlockSpec((3, 3 * Cw, Cw), lambda n, t: (0, 0, 0))
    b1 = b1.reshape(1, Cw).astype(jnp.float32)
    b2 = b2.reshape(1, Cw).astype(jnp.float32)
    b3 = b3.reshape(1, Cout).astype(jnp.float32)

    # One zero row above/below so every row tile reads a fixed-size
    # (tile_h + 2)-row halo; the kernel re-zeroes conv1's output on those rows.
    x_pad = jnp.pad(x_nhwc, ((0, 0), (1, 1), (0, 0), (0, 0)))

    vmem_limit = _vmem_limit_bytes(H, W, Cin, Cw, Cout, tile_h,
                                   x_pad.dtype.itemsize,
                                   jnp.dtype(out_dtype).itemsize)

    return pl.pallas_call(
        bottleneck_kernel,
        out_shape=jax.ShapeDtypeStruct((N, H, W, Cout), out_dtype),
        grid=(N, n_tiles),
        in_specs=[
            # Whole padded image per batch element, resident across row tiles.
            pl.BlockSpec((1, H + 2, W, Cin), lambda n, t: (n, 0, 0, 0)),
            pl.BlockSpec((Cin, Cw), lambda n, t: (0, 0)),             # w1*s1
            pl.BlockSpec((1, Cw), lambda n, t: (0, 0)),               # b1
            w2_spec,                                                  # w2*s2
            pl.BlockSpec((1, Cw), lambda n, t: (0, 0)),               # b2
            pl.BlockSpec((Cw, Cout), lambda n, t: (0, 0)),            # w3*s3
            pl.BlockSpec((1, Cout), lambda n, t: (0, 0)),             # b3
        ],
        out_specs=pl.BlockSpec((1, tile_h, W, Cout), lambda n, t: (n, t, 0, 0)),
        compiler_params=pltpu.CompilerParams(
            # Row tiles of one image share the resident full-image input block:
            # keep the (mega)core split on the batch axis only.
            dimension_semantics=("parallel", "arbitrary"),
            vmem_limit_bytes=vmem_limit),
    )(x_pad, w1s, b1, w2s, b2, w3s, b3)


def bottleneck_reference(x_nhwc, w1, bn1, w2, bn2, w3, bn3, eps=1e-5):
    """Pure-JAX f32 reference (eval-mode BN), for correctness checking."""
    def bn(y, p):
        g, b, m, v = p
        return (y - m) / jnp.sqrt(v + eps) * g + b
    h = jnp.einsum('nhwc,cd->nhwd', x_nhwc, w1)
    h = jax.nn.relu(bn(h, bn1))
    h = lax.conv_general_dilated(h, w2, window_strides=(1, 1), padding='SAME',
                                 dimension_numbers=('NHWC', 'HWIO', 'NHWC'))
    h = jax.nn.relu(bn(h, bn2))
    h = jnp.einsum('nhwc,cd->nhwd', h, w3)
    h = bn(h, bn3)
    return jax.nn.relu(h + x_nhwc)


if __name__ == "__main__":
    # Module config: inplanes = planes * expansion so downsample=None applies.
    N, H, W = 2, 16, 16
    planes = 32
    inplanes = planes * 4          # 128 -> lane-dense residual/output channels
    width = planes                 # base_width=64, groups=1 -> width = planes
    cout = planes * 4              # 128

    key = jax.random.PRNGKey(0)
    keys = jax.random.split(key, 16)

    # Input in PyTorch NCHW convention, transposed to NHWC for the kernel.
    x_nchw = jax.random.normal(keys[0], (N, inplanes, H, W), jnp.float32)
    x_nhwc = jnp.transpose(x_nchw, (0, 2, 3, 1))

    # Conv weights in PyTorch layouts -> kernel layouts:
    #   conv1x1 [out,in,1,1] -> [in,out];  conv3x3 [out,in,3,3] -> HWIO.
    w1_t = 0.1 * jax.random.normal(keys[1], (width, inplanes, 1, 1), jnp.float32)
    w2_t = 0.1 * jax.random.normal(keys[2], (width, width, 3, 3), jnp.float32)
    w3_t = 0.1 * jax.random.normal(keys[3], (cout, width, 1, 1), jnp.float32)
    w1 = jnp.transpose(w1_t[:, :, 0, 0], (1, 0))            # (inplanes, width)
    w2 = jnp.transpose(w2_t, (2, 3, 1, 0))                  # (3, 3, width, width)
    w3 = jnp.transpose(w3_t[:, :, 0, 0], (1, 0))            # (width, cout)

    def make_bn(kg, kb, km, kv, c):
        gamma = 0.5 + jax.random.uniform(kg, (c,), jnp.float32)
        beta = 0.1 * jax.random.normal(kb, (c,), jnp.float32)
        mean = 0.1 * jax.random.normal(km, (c,), jnp.float32)
        var = 0.5 + jax.random.uniform(kv, (c,), jnp.float32)
        return (gamma, beta, mean, var)

    bn1 = make_bn(keys[4], keys[5], keys[6], keys[7], width)
    bn2 = make_bn(keys[8], keys[9], keys[10], keys[11], width)
    bn3 = make_bn(keys[12], keys[13], keys[14], keys[15], cout)

    # Auto tile_h (-> 16 here: whole image per step, no halo recompute).
    out = bottleneck_pallas(x_nhwc, w1, bn1, w2, bn2, w3, bn3)
    out = jax.block_until_ready(out)

    ref = bottleneck_reference(x_nhwc, w1, bn1, w2, bn2, w3, bn3)
    ref = jax.block_until_ready(ref)

    assert out.shape == (N, H, W, cout)
    # bf16 matmul inputs (f32 accumulation) -> loosened tolerance vs f32 ref.
    assert jnp.allclose(out, ref, rtol=5e-2, atol=1e-1), \
        f"max abs err {jnp.max(jnp.abs(out - ref))}"

    print("KERNEL_OK")
</pallas_src>

<mosaic_0001>
module attributes {stable_mosaic.version = 11 : i64} {
  func.func @bottleneck_kernel(%arg0: i32, %arg1: i32, %arg2: memref<1x18x16x128xf32, #tpu.memory_space<vmem>>, %arg3: memref<128x32xbf16, #tpu.memory_space<vmem>>, %arg4: memref<1x32xf32, #tpu.memory_space<vmem>>, %arg5: memref<288x32xbf16, #tpu.memory_space<vmem>>, %arg6: memref<1x32xf32, #tpu.memory_space<vmem>>, %arg7: memref<32x128xbf16, #tpu.memory_space<vmem>>, %arg8: memref<1x128xf32, #tpu.memory_space<vmem>>, %arg9: memref<1x16x16x128xf32, #tpu.memory_space<vmem>>) attributes {dimension_semantics = [#tpu.dimension_semantics<parallel>, #tpu.dimension_semantics<arbitrary>], iteration_bounds = array<i64: 2, 1>, scalar_prefetch = 0 : i64, scratch_operands = 0 : i64, tpu.core_type = #tpu.core_type<tc>, window_params = [{transform_indices = @transform_0, window_bounds = array<i64: 1, 18, 16, 128>}, {pipeline_mode = #tpu.pipeline_mode<synchronous>, transform_indices = @transform_1, window_bounds = array<i64: 128, 32>}, {pipeline_mode = #tpu.pipeline_mode<synchronous>, transform_indices = @transform_2, window_bounds = array<i64: 1, 32>}, {pipeline_mode = #tpu.pipeline_mode<synchronous>, transform_indices = @transform_3, window_bounds = array<i64: 288, 32>}, {pipeline_mode = #tpu.pipeline_mode<synchronous>, transform_indices = @transform_4, window_bounds = array<i64: 1, 32>}, {pipeline_mode = #tpu.pipeline_mode<synchronous>, transform_indices = @transform_5, window_bounds = array<i64: 32, 128>}, {pipeline_mode = #tpu.pipeline_mode<synchronous>, transform_indices = @transform_6, window_bounds = array<i64: 1, 128>}, {transform_indices = @transform_7, window_bounds = array<i64: 1, 16, 16, 128>}]} {
    %c16_i32 = arith.constant 16 : i32
    %0 = arith.muli %arg1, %c16_i32 : i32
    %1 = tpu.assume_multiple %0, 16 : i32
    %c0 = arith.constant 0 : index
    %2 = arith.index_cast %1 : i32 to index
    %c0_0 = arith.constant 0 : index
    %c0_1 = arith.constant 0 : index
    %3 = vector.load %arg2[%c0, %2, %c0_0, %c0_1] : memref<1x18x16x128xf32, #tpu.memory_space<vmem>>, vector<1x18x16x128xf32>
    %4 = vector.shape_cast %3 : vector<1x18x16x128xf32> to vector<18x16x128xf32>
    %5 = vector.shape_cast %4 : vector<18x16x128xf32> to vector<288x128xf32>
    %6 = arith.truncf %5 : vector<288x128xf32> to vector<288x128xbf16>
    %c0_2 = arith.constant 0 : index
    %c0_3 = arith.constant 0 : index
    %7 = vector.load %arg3[%c0_2, %c0_3] : memref<128x32xbf16, #tpu.memory_space<vmem>>, vector<128x32xbf16>
    %cst = arith.constant dense<0.000000e+00> : vector<288x32xf32>
    %8 = tpu.matmul %6, %7, %cst {dimension_numbers = #tpu.dot_dimension_numbers<[1], [0], [0], [1], [0, 0, 1, 1], [], []>} : vector<288x128xbf16>, vector<128x32xbf16>, vector<288x32xf32> -> vector<288x32xf32>
    %c0_4 = arith.constant 0 : index
    %c0_5 = arith.constant 0 : index
    %9 = vector.load %arg4[%c0_4, %c0_5] : memref<1x32xf32, #tpu.memory_space<vmem>>, vector<1x32xf32>
    %10 = vector.broadcast %9 : vector<1x32xf32> to vector<288x32xf32>
    %11 = arith.addf %8, %10 : vector<288x32xf32>
    %cst_6 = arith.constant 0.000000e+00 : f32
    %12 = vector.broadcast %cst_6 : f32 to vector<288x32xf32>
    %13 = arith.maximumf %11, %12 : vector<288x32xf32>
    %14 = vector.shape_cast %13 : vector<288x32xf32> to vector<18x16x32xf32>
    %c1_i32 = arith.constant 1 : i32
    %15 = arith.subi %1, %c1_i32 : i32
    %16 = tpu.iota {dimensions = array<i32: 0>} : vector<18x1x1xi32>
    %17 = vector.broadcast %15 : i32 to vector<18x1x1xi32>
    %18 = arith.addi %17, %16 : vector<18x1x1xi32>
    %c0_i32 = arith.constant 0 : i32
    %19 = vector.broadcast %c0_i32 : i32 to vector<18x1x1xi32>
    %20 = arith.cmpi sge, %18, %19 : vector<18x1x1xi32>
    %c16_i32_7 = arith.constant 16 : i32
    %21 = vector.broadcast %c16_i32_7 : i32 to vector<18x1x1xi32>
    %22 = arith.cmpi slt, %18, %21 : vector<18x1x1xi32>
    %23 = arith.andi %20, %22 : vector<18x1x1xi1>
    %cst_8 = arith.constant 0.000000e+00 : f32
    %24 = vector.shape_cast %23 : vector<18x1x1xi1> to vector<18x1x1xi1>
    %25 = vector.broadcast %24 : vector<18x1x1xi1> to vector<18x16x32xi1>
    %26 = vector.broadcast %cst_8 : f32 to vector<18x16x32xf32>
    %27 = arith.select %25, %14, %26 : vector<18x16x32xi1>, vector<18x16x32xf32>
    %28 = vector.shape_cast %27 : vector<18x16x32xf32> to vector<288x32xf32>
    %c1_i32_9 = arith.constant 1 : i32
    %29 = tpu.dynamic_rotate %28 by %c1_i32_9 dim 0 : vector<288x32xf32>, i32 -> vector<288x32xf32>
    %c287_i32 = arith.constant 287 : i32
    %30 = tpu.dynamic_rotate %28 by %c287_i32 dim 0 : vector<288x32xf32>, i32 -> vector<288x32xf32>
    %31 = tpu.iota {dimensions = array<i32: 1>} : vector<1x16x1xi32>
    %c0_i32_10 = arith.constant 0 : i32
    %32 = vector.broadcast %c0_i32_10 : i32 to vector<1x16x1xi32>
    %33 = arith.cmpi eq, %31, %32 : vector<1x16x1xi32>
    %34 = arith.truncf %29 : vector<288x32xf32> to vector<288x32xbf16>
    %35 = vector.shape_cast %34 : vector<288x32xbf16> to vector<18x16x32xbf16>
    %cst_11 = arith.constant 0.000000e+00 : bf16
    %36 = vector.shape_cast %33 : vector<1x16x1xi1> to vector<1x16x1xi1>
    %37 = vector.broadcast %36 : vector<1x16x1xi1> to vector<18x16x32xi1>
    %38 = vector.broadcast %cst_11 : bf16 to vector<18x16x32xbf16>
    %39 = arith.select %37, %38, %35 : vector<18x16x32xi1>, vector<18x16x32xbf16>
    %40 = arith.truncf %27 : vector<18x16x32xf32> to vector<18x16x32xbf16>
    %c15_i32 = arith.constant 15 : i32
    %41 = vector.broadcast %c15_i32 : i32 to vector<1x16x1xi32>
    %42 = arith.cmpi eq, %31, %41 : vector<1x16x1xi32>
    %43 = arith.truncf %30 : vector<288x32xf32> to vector<288x32xbf16>
    %44 = vector.shape_cast %43 : vector<288x32xbf16> to vector<18x16x32xbf16>
    %cst_12 = arith.constant 0.000000e+00 : bf16
    %45 = vector.shape_cast %42 : vector<1x16x1xi1> to vector<1x16x1xi1>
    %46 = vector.broadcast %45 : vector<1x16x1xi1> to vector<18x16x32xi1>
    %47 = vector.broadcast %cst_12 : bf16 to vector<18x16x32xbf16>
    %48 = arith.select %46, %47, %44 : vector<18x16x32xi1>, vector<18x16x32xbf16>
    %49 = vector.extract_strided_slice %39 {offsets = [0, 0, 0], sizes = [16, 16, 32], strides = [1, 1, 1]} : vector<18x16x32xbf16> to vector<16x16x32xbf16>
    %50 = vector.extract_strided_slice %40 {offsets = [0, 0, 0], sizes = [16, 16, 32], strides = [1, 1, 1]} : vector<18x16x32xbf16> to vector<16x16x32xbf16>
    %51 = vector.extract_strided_slice %48 {offsets = [0, 0, 0], sizes = [16, 16, 32], strides = [1, 1, 1]} : vector<18x16x32xbf16> to vector<16x16x32xbf16>
    %52 = vector.extract_strided_slice %39 {offsets = [1, 0, 0], sizes = [16, 16, 32], strides = [1, 1, 1]} : vector<18x16x32xbf16> to vector<16x16x32xbf16>
    %53 = vector.extract_strided_slice %40 {offsets = [1, 0, 0], sizes = [16, 16, 32], strides = [1, 1, 1]} : vector<18x16x32xbf16> to vector<16x16x32xbf16>
    %54 = vector.extract_strided_slice %48 {offsets = [1, 0, 0], sizes = [16, 16, 32], strides = [1, 1, 1]} : vector<18x16x32xbf16> to vector<16x16x32xbf16>
    %55 = vector.extract_strided_slice %39 {offsets = [2, 0, 0], sizes = [16, 16, 32], strides = [1, 1, 1]} : vector<18x16x32xbf16> to vector<16x16x32xbf16>
    %56 = vector.extract_strided_slice %40 {offsets = [2, 0, 0], sizes = [16, 16, 32], strides = [1, 1, 1]} : vector<18x16x32xbf16> to vector<16x16x32xbf16>
    %57 = vector.extract_strided_slice %48 {offsets = [2, 0, 0], sizes = [16, 16, 32], strides = [1, 1, 1]} : vector<18x16x32xbf16> to vector<16x16x32xbf16>
    %58 = tpu.concatenate %49, %50, %51, %52, %53, %54, %55, %56, %57 in 2 : vector<16x16x32xbf16>, vector<16x16x32xbf16>, vector<16x16x32xbf16>, vector<16x16x32xbf16>, vector<16x16x32xbf16>, vector<16x16x32xbf16>, vector<16x16x32xbf16>, vector<16x16x32xbf16>, vector<16x16x32xbf16> -> vector<16x16x288xbf16>
    %59 = vector.shape_cast %58 : vector<16x16x288xbf16> to vector<256x288xbf16>
    %c0_13 = arith.constant 0 : index
    %c0_14 = arith.constant 0 : index
    %60 = vector.load %arg5[%c0_13, %c0_14] : memref<288x32xbf16, #tpu.memory_space<vmem>>, vector<288x32xbf16>
    %cst_15 = arith.constant dense<0.000000e+00> : vector<256x32xf32>
    %61 = tpu.matmul %59, %60, %cst_15 {dimension_numbers = #tpu.dot_dimension_numbers<[1], [0], [0], [1], [0, 0, 1, 1], [], []>} : vector<256x288xbf16>, vector<288x32xbf16>, vector<256x32xf32> -> vector<256x32xf32>
    %c0_16 = arith.constant 0 : index
    %c0_17 = arith.constant 0 : index
    %62 = vector.load %arg6[%c0_16, %c0_17] : memref<1x32xf32, #tpu.memory_space<vmem>>, vector<1x32xf32>
    %63 = vector.broadcast %62 : vector<1x32xf32> to vector<256x32xf32>
    %64 = arith.addf %61, %63 : vector<256x32xf32>
    %cst_18 = arith.constant 0.000000e+00 : f32
    %65 = vector.broadcast %cst_18 : f32 to vector<256x32xf32>
    %66 = arith.maximumf %64, %65 : vector<256x32xf32>
    %67 = arith.truncf %66 : vector<256x32xf32> to vector<256x32xbf16>
    %c0_19 = arith.constant 0 : index
    %c0_20 = arith.constant 0 : index
    %68 = vector.load %arg7[%c0_19, %c0_20] : memref<32x128xbf16, #tpu.memory_space<vmem>>, vector<32x128xbf16>
    %cst_21 = arith.constant dense<0.000000e+00> : vector<256x128xf32>
    %69 = tpu.matmul %67, %68, %cst_21 {dimension_numbers = #tpu.dot_dimension_numbers<[1], [0], [0], [1], [0, 0, 1, 1], [], []>} : vector<256x32xbf16>, vector<32x128xbf16>, vector<256x128xf32> -> vector<256x128xf32>
    %c0_22 = arith.constant 0 : index
    %c0_23 = arith.constant 0 : index
    %70 = vector.load %arg8[%c0_22, %c0_23] : memref<1x128xf32, #tpu.memory_space<vmem>>, vector<1x128xf32>
    %71 = vector.broadcast %70 : vector<1x128xf32> to vector<256x128xf32>
    %72 = arith.addf %69, %71 : vector<256x128xf32>
    %73 = vector.extract_strided_slice %4 {offsets = [1, 0, 0], sizes = [16, 16, 128], strides = [1, 1, 1]} : vector<18x16x128xf32> to vector<16x16x128xf32>
    %74 = vector.shape_cast %73 : vector<16x16x128xf32> to vector<256x128xf32>
    %75 = arith.addf %72, %74 : vector<256x128xf32>
    %cst_24 = arith.constant 0.000000e+00 : f32
    %76 = vector.broadcast %cst_24 : f32 to vector<256x128xf32>
    %77 = arith.maximumf %75, %76 : vector<256x128xf32>
    %78 = vector.shape_cast %77 : vector<256x128xf32> to vector<16x16x128xf32>
    %c0_25 = arith.constant 0 : index
    %c0_26 = arith.constant 0 : index
    %c0_27 = arith.constant 0 : index
    %c0_28 = arith.constant 0 : index
    %79 = vector.load %arg9[%c0_25, %c0_26, %c0_27, %c0_28] : memref<1x16x16x128xf32, #tpu.memory_space<vmem>>, vector<1x16x16x128xf32>
    %80 = vector.shape_cast %79 : vector<1x16x16x128xf32> to vector<16x16x128xf32>
    %81 = vector.shape_cast %78 : vector<16x16x128xf32> to vector<1x16x16x128xf32>
    tpu.vector_store %arg9[%c0_25, %c0_26, %c0_27, %c0_28], %81 {strides = array<i32>} : memref<1x16x16x128xf32, #tpu.memory_space<vmem>>, vector<1x16x16x128xf32>,
    return
  }
  func.func @transform_0(%arg0: i32, %arg1: i32) -> (i32, i32, i32, i32) {
    %c0_i32 = arith.constant 0 : i32
    %c0_i32_0 = arith.constant 0 : i32
    %c0_i32_1 = arith.constant 0 : i32
    %c0_i32_2 = arith.constant 0 : i32
    return %arg0, %c0_i32, %c0_i32_0, %c0_i32_1 : i32, i32, i32, i32
  }
  func.func @transform_1(%arg0: i32, %arg1: i32) -> (i32, i32) {
    %c0_i32 = arith.constant 0 : i32
    %c0_i32_0 = arith.constant 0 : i32
    %c0_i32_1 = arith.constant 0 : i32
    return %c0_i32, %c0_i32_0 : i32, i32
  }
  func.func @transform_2(%arg0: i32, %arg1: i32) -> (i32, i32) {
    %c0_i32 = arith.constant 0 : i32
    %c0_i32_0 = arith.constant 0 : i32
    %c0_i32_1 = arith.constant 0 : i32
    return %c0_i32, %c0_i32_0 : i32, i32
  }
  func.func @transform_3(%arg0: i32, %arg1: i32) -> (i32, i32) {
    %c0_i32 = arith.constant 0 : i32
    %c0_i32_0 = arith.constant 0 : i32
    %c0_i32_1 = arith.constant 0 : i32
    return %c0_i32, %c0_i32_0 : i32, i32
  }
  func.func @transform_4(%arg0: i32, %arg1: i32) -> (i32, i32) {
    %c0_i32 = arith.constant 0 : i32
    %c0_i32_0 = arith.constant 0 : i32
    %c0_i32_1 = arith.constant 0 : i32
    return %c0_i32, %c0_i32_0 : i32, i32
  }
  func.func @transform_5(%arg0: i32, %arg1: i32) -> (i32, i32) {
    %c0_i32 = arith.constant 0 : i32
    %c0_i32_0 = arith.constant 0 : i32
    %c0_i32_1 = arith.constant 0 : i32
    return %c0_i32, %c0_i32_0 : i32, i32
  }
  func.func @transform_6(%arg0: i32, %arg1: i32) -> (i32, i32) {
    %c0_i32 = arith.constant 0 : i32
    %c0_i32_0 = arith.constant 0 : i32
    %c0_i32_1 = arith.constant 0 : i32
    return %c0_i32, %c0_i32_0 : i32, i32
  }
  func.func @transform_7(%arg0: i32, %arg1: i32) -> (i32, i32, i32, i32) {
    %c0_i32 = arith.constant 0 : i32
    %c0_i32_0 = arith.constant 0 : i32
    %c0_i32_1 = arith.constant 0 : i32
    return %arg0, %arg1, %c0_i32, %c0_i32_0 : i32, i32, i32, i32
  }
}

</mosaic_0001>

<bundles_post_ra>
// kernel: bottleneck_pallas.1
= control target key start
LH: loop header
LB: loop body
LE: loop exit
PB: predicated region body
PF: predicated region fallthrough
CT: control target
= control target key end

     0   :  { %12 = vsyncpa [#allocation3], 0  ;;  %s4701_s0 = inlined_call_operand.vmem [shape: f32[2,18,16,128], index: 0, kind: input, shape index: {}]   ;;  %s4702_s1 = inlined_call_operand.vmem [shape: bf16[128,32], index: 1, kind: input, shape index: {}]   ;;  %s4703_s2 = inlined_call_operand.vmem [shape: f32[1,32], index: 2, kind: input, shape index: {}]   ;;  %s4704_s3 = inlined_call_operand.vmem [shape: bf16[288,32], index: 3, kind: input, shape index: {}]   ;;  %s4705_s4 = inlined_call_operand.vmem [shape: f32[1,32], index: 4, kind: input, shape index: {}]   ;;  %s4706_s5 = inlined_call_operand.vmem [shape: bf16[32,128], index: 5, kind: input, shape index: {}]   ;;  %s4707_s6 = inlined_call_operand.vmem [shape: f32[1,128], index: 6, kind: input, shape index: {}]   ;;  %s4708_s7 = inlined_call_operand.hbm [shape: f32[2,16,16,128], index: 7, kind: output, shape index: {}]  }
   0x1   :  { %14 = vsyncpa [#allocation3 + $0x1], 0  ;;  %s3187_s24 = smov 0   ;;  %s3189_s25 = smov 0  }
   0x2   :  { %s3191_s26 = smov 0   ;;  %s3193_s27 = smov 0  }
   0x3   :  { %s3195_s28 = smov 0   ;;  %s3197_s29 = smov 0  }
   0x4 LB: > { %s2540_s30 = sadd.s32 4294967295, %s3135_s29   ;;  %s2541_s8 = sadd.s32 4294967294, %s3135_s29   ;;  %s3135_s29 = sphi %s3197_s29, %s20_s29   ;;  %s3131_s28 = sphi %s3195_s28, %s4827_s28   ;;  %s3127_s27 = sphi %s3193_s27, %s4826_s27   ;;  %s3123_s26 = sphi %s3191_s26, %s4825_s26   ;;  %s3119_s25 = sphi %s3189_s25, %s4824_s25   ;;  %s3115_s24 = sphi %s3187_s24, %s4823_s24  }
   0x5   : > { %s32_s9 = sadd.s32 1, %s3131_s28  ;;  %s193_s10 = sadd.s32 1, %s3123_s26 }
   0x6   : > { %p34_p0 = scmp.ge.s32.totalorder %s32_s9, 2  ;;  %p203_p1 = scmp.ne.s32.totalorder %s3123_s26, %s3119_s25 }
   0x7   : > { %p204_p2 = scmp.eq.s32.totalorder %s2540_s30, 1  ;;  %p209_p3 = scmp.ne.s32.totalorder %s3119_s25, %s3115_s24 }
   0x8   : > { %s4829_s9 = smov (%p34_p0, %s32_s9), 0  ;;  %p210_p5 = scmp.eq.s32.totalorder %s2541_s8, 1 }
   0x9   : > { %p3227_p4 = por %p204_p2, %p203_p1  ;;  %s188_s12 = ssub.s32 %s3131_s28, %s4829_s9 }
   0xa   : > { %p2544_p6 = scmp.ge.s32.totalorder %s3135_s29, 1  ;;  %p191_p7 = scmp.eq.s32.totalorder %s188_s12, 0 }
   0xb   : > { %p3234_p8 = por %p210_p5, %p209_p3  ;;  %p254_p9 = scmp.lt.s32.totalorder %s3135_s29, 3 }
   0xc   : > { %s3240_s14 = scalar_select %p191_p7, %s3123_s26, %s193_s10  }
   0xd   : > { %p255_p10 = pnand %p2544_p6, %p254_p9 }
   0xf   : > { %258 = sbr.rel (%p255_p10) target bundleno = 1049 (0x419), region = 48 }
  0x16   : > { %v2997_v0 = vld [vmem:[%s4702_s1] sm:$0xff]   ;;  %p286_p11 = scmp.lt.s32.totalorder %s3127_s27, 1  ;;  %v2998_v1 = vld [vmem:[%s4702_s1 + $0x8] sm:$0xff]   ;;  %v2999_v2 = vld [vmem:[%s4702_s1 + $0x10] sm:$0xff]   ;;  %v4709_v62 = vmov 0.0|0.0   ;;  %s3138_s23 = smov 32   ;;  %v817_v63 = vlaneseq }
  0x17   : > { %2792 = vmatprep.subr.bf16.mxu0 %v2997_v0  ;;  %v3000_v3 = vld [vmem:[%s4702_s1 + $0x18] sm:$0xff]   ;;  %v3001_v7 = vld [vmem:[%s4702_s1 + $0x20] sm:$0xff]   ;;  %v3002_v8 = vld [vmem:[%s4702_s1 + $0x28] sm:$0xff]   ;;  %1064 = vrot.lane.b32.xlu1 %v4709_v62, %s3138_s23  ;;  %vm3139_vm1 = vmmov 0   ;;  %s3142_s16 = smov 64   ;;  %s3143_s21 = smov 96  }
  0x18   : > { %s287_s19 = scalar_select %p286_p11, %s3127_s27, 1  ;;  %2793 = vmatpush3.bf16.msra.mxu0 %v2997_v0  ;;  %v3003_v9 = vld [vmem:[%s4702_s1 + $0x30] sm:$0xff]   ;;  %v3004_v10 = vld [vmem:[%s4702_s1 + $0x38] sm:$0xff]   ;;  %v3311_v0 = vshrl.u32 %v817_v63, 7  ;;  %vm955_vm2 = vmpackc.low %vm3139_vm1, %vm3139_vm1  ;;  %vm1292_vm10 = vcmask 261120   ;;  %vm1341_vm11 = vcmask 523264  }
  0x19   : > { %2794 = vmatprep.subr.bf16.mxu0 %v2998_v1  ;;  %vm1374_vm12 = vcmask 785408   ;;  %s283_s10 = sand.u32 1, %s3119_s25  }
  0x1a   : > { %s2932_s22 = smul.u32 288, %s287_s19  ;;  %vm930_vm4 = vcmp.eq.s32.totalorder %v3311_v0, 0  ;;  %vm892_vm6 = vcmp.lt.s32.totalorder %v3311_v0, 7  ;;  %vm819_vm7 = vcmp.lt.s32.totalorder %v3311_v0, 1  ;;  %s2545_s17 = sshll.u32 %s283_s10, 8 }
  0x1b   : > { %vm3342_vm5 = vmpackc.low %vm930_vm4, %vm930_vm4  ;;  %s4554_s18 = scalar_lea.vmem [#allocation2], %s2545_s17  ;;  %s2617_s19 = sshll.u32 %s3127_s27, 12 }
  0x1c   : > { %s3256_s8 = scalar_lea.vmem %s4701_s0, %s2932_s22  ;;  %2795 = vmatpush3.bf16.msra.mxu0 %v2998_v1  ;;  %v3005_v1 = vld [vmem:[%s4704_s3 + $0x40] sm:$0xff]   ;;  %s4655_s27 = scalar_lea.sflag [#allocation3], %s283_s10 }
  0x1d   : > { %2796 = vmatprep.subr.bf16.mxu0 %v2999_v2  ;;  %v298_v4 = vld [vmem:[%s3256_s8] sm:$0xff]  ;;  %v299_v5 = vld [vmem:[%s3256_s8 + $0x8] sm:$0xff]  ;;  %v300_v11 = vld [vmem:[%s3256_s8 + $0x10] sm:$0xff]  ;;  %2916 = vmatprep.subr.bf16.mxu1 %v3005_v1  ;;  %s3144_s22 = smov [#allocation2]  }
  0x1e   : > { %v334_v6 = vpack.c.bf16 %v299_v5, %v298_v4  ;;  %v301_v12 = vld [vmem:[%s3256_s8 + $0x18] sm:$0xff]  ;;  %v302_v13 = vld [vmem:[%s3256_s8 + $0x20] sm:$0xff]  ;;  %v303_v14 = vld [vmem:[%s3256_s8 + $0x28] sm:$0xff]  ;;  %s3061_s30 = sshll.u32 %s3144_s22, 4  ;;  %s3062_s30 = int_to_ptr.vmem [resolvable:$false] %s3061_s30 }
  0x1f   : > { %v335_v15 = vpack.c.bf16 %v301_v12, %v300_v11  ;;  %v336_v16 = vpack.c.bf16 %v303_v14, %v302_v13  ;;  %v304_v17 = vld [vmem:[%s3256_s8 + $0x30] sm:$0xff]  ;;  %v305_v18 = vld [vmem:[%s3256_s8 + $0x38] sm:$0xff]  ;;  %v306_v19 = vld [vmem:[%s3256_s8 + $0x40] sm:$0xff]  ;;  %v3140_v12 = vmov 0   ;;  %s3063_s12 = scalar_lea.vmem %s3062_s30, 8192 }
  0x20   : > { %2797 = vmatpush3.bf16.msra.mxu0 %v2999_v2  ;;  %2808 = vmatprep.mubr.bf16.mxu0 %v334_v6  ;;  %v307_v20 = vld [vmem:[%s3256_s8 + $0x48] sm:$0xff]  ;;  %v337_v21 = vpack.c.bf16 %v305_v18, %v304_v17  ;;  %v308_v23 = vld [vmem:[%s3256_s8 + $0x50] sm:$0xff]  ;;  %v309_v24 = vld [vmem:[%s3256_s8 + $0x58] sm:$0xff]  ;;  %v957_v13 = vsel %vm955_vm2, 65537, %v3140_v12 }
  0x21   : > { %2798 = vmatprep.subr.bf16.mxu0 %v3000_v3  ;;  %v338_v22 = vpack.c.bf16 %v307_v20, %v306_v19  ;;  %v310_v25 = vld [vmem:[%s3256_s8 + $0x60] sm:$0xff]  ;;  %v311_v26 = vld [vmem:[%s3256_s8 + $0x68] sm:$0xff]  ;;  %v339_v27 = vpack.c.bf16 %v309_v24, %v308_v23  ;;  %v312_v29 = vld [vmem:[%s3256_s8 + $0x70] sm:$0xff] }
  0x22   : > { %v340_v28 = vpack.c.bf16 %v311_v26, %v310_v25  ;;  %v313_v30 = vld [vmem:[%s3256_s8 + $0x78] sm:$0xff]  ;;  %v314_v31 = vld [vmem:[%s3256_s8 + $0x80] sm:$0xff]  ;;  %v315_v32 = vld [vmem:[%s3256_s8 + $0x88] sm:$0xff] }
  0x23   : > { %v341_v33 = vpack.c.bf16 %v313_v30, %v312_v29  ;;  %v342_v34 = vpack.c.bf16 %v315_v32, %v314_v31  ;;  %v316_v35 = vld [vmem:[%s3256_s8 + $0x90] sm:$0xff]  ;;  %v317_v36 = vld [vmem:[%s3256_s8 + $0x98] sm:$0xff]  ;;  %v318_v37 = vld [vmem:[%s3256_s8 + $0xa0] sm:$0xff]  ;;  %v956_v29 = vsel %vm3342_vm5, 65537, %v3140_v12 }
  0x24   : > { %2799 = vmatpush3.bf16.msra.mxu0 %v3000_v3  ;;  %v319_v38 = vld [vmem:[%s3256_s8 + $0xa8] sm:$0xff]  ;;  %v343_v39 = vpack.c.bf16 %v317_v36, %v316_v35  ;;  %v320_v41 = vld [vmem:[%s3256_s8 + $0xb0] sm:$0xff]  ;;  %v321_v42 = vld [vmem:[%s3256_s8 + $0xb8] sm:$0xff]  ;;  %v929_v3 = vadd.s32 8, %v3311_v0 }
  0x25   : > { %2800 = vmatprep.subr.bf16.mxu0 %v3001_v7  ;;  %v344_v40 = vpack.c.bf16 %v319_v38, %v318_v37  ;;  %v322_v43 = vld [vmem:[%s3256_s8 + $0xc0] sm:$0xff]  ;;  %v323_v44 = vld [vmem:[%s3256_s8 + $0xc8] sm:$0xff]  ;;  %v345_v45 = vpack.c.bf16 %v321_v42, %v320_v41  ;;  %v324_v47 = vld [vmem:[%s3256_s8 + $0xd0] sm:$0xff]  ;;  %v2556_v38 = vcombine.low %v956_v29, %v957_v13 }
  0x26   : > { %v346_v46 = vpack.c.bf16 %v323_v44, %v322_v43  ;;  %v325_v48 = vld [vmem:[%s3256_s8 + $0xd8] sm:$0xff]  ;;  %v326_v49 = vld [vmem:[%s3256_s8 + $0xe0] sm:$0xff]  ;;  %v327_v50 = vld [vmem:[%s3256_s8 + $0xe8] sm:$0xff]  ;;  %vm999_vm0 = vcmp.eq.s32.totalorder %v929_v3, 15 }
  0x27   : > { %v347_v51 = vpack.c.bf16 %v325_v48, %v324_v47  ;;  %v348_v52 = vpack.c.bf16 %v327_v50, %v326_v49  ;;  %v328_v53 = vld [vmem:[%s3256_s8 + $0xf0] sm:$0xff]  ;;  %v329_v54 = vld [vmem:[%s3256_s8 + $0xf8] sm:$0xff]  ;;  %v330_v55 = vld [vmem:[%s3256_s8 + $0x100] sm:$0xff]  ;;  %vm3401_vm9 = vcmp.ne.s16.totalorder %v2556_v38, 0 }
  0x28   : > { %2801 = vmatpush3.bf16.msra.mxu0 %v3001_v7  ;;  %v331_v56 = vld [vmem:[%s3256_s8 + $0x108] sm:$0xff]  ;;  %v349_v57 = vpack.c.bf16 %v329_v54, %v328_v53  ;;  %v332_v59 = vld [vmem:[%s3256_s8 + $0x110] sm:$0xff]  ;;  %v333_v60 = vld [vmem:[%s3256_s8 + $0x118] sm:$0xff] }
  0x29   : > { %2802 = vmatprep.subr.bf16.mxu0 %v3002_v8  ;;  %v350_v58 = vpack.c.bf16 %v331_v56, %v330_v55  ;;  %v351_v61 = vpack.c.bf16 %v333_v60, %v332_v59  ;;  %v3006_v2 = vld [vmem:[%s4704_s3] sm:$0xff]   ;;  %v3007_v4 = vld [vmem:[%s4704_s3 + $0x48] sm:$0xff]   ;;  %v3009_v6 = vld [vmem:[%s4704_s3 + $0x50] sm:$0xff]   ;;  %v4815_v55 = vmov 0.0|0.0  }
  0x2a   : > { %2924 = vmatpush3.bf16.msra.mxu1 %v3006_v2  ;;  %v3008_v5 = vld [vmem:[%s4704_s3 + $0x8] sm:$0xff]   ;;  %v3332_v7 = vld [vmem:[%s4703_s2] ss:$0 sm:$0xff]  ;;  %vm1023_vm3 = vmpackc.low %vm999_vm0, %vm999_vm0 }
  0x2b   : > { %2917 = vmatprep.subr.bf16.mxu1 %v3007_v4  ;;  %v1025_v14 = vsel %vm1023_vm3, 65537, %v3140_v12  ;;  %v3012_v25 = vld [vmem:[%s4704_s3 + $0x18] sm:$0xff]   ;;  %v3013_v30 = vld [vmem:[%s4704_s3 + $0x60] sm:$0xff]   ;;  %v3016_v56 = vld [vmem:[%s4704_s3 + $0x28] sm:$0xff]  }
  0x2c   : > { %2803 = vmatpush3.bf16.msra.mxu0 %v3002_v8  ;;  %v2557_v23 = vcombine.low %v957_v13, %v1025_v14 }
  0x2d   : > { %2804 = vmatprep.subr.bf16.mxu0 %v3003_v9 }
  0x2e   : > { %2925 = vmatpush3.bf16.msra.mxu1 %v3008_v5  ;;  %vm3372_vm8 = vcmp.ne.s16.totalorder %v2557_v23, 0 }
  0x2f   : > { %2918 = vmatprep.subr.bf16.mxu1 %v3009_v6 }
  0x30   : > { %2805 = vmatpush3.bf16.msra.mxu0 %v3003_v9  ;;  %v3010_v9 = vld [vmem:[%s4704_s3 + $0x10] sm:$0xff]  }
  0x31   : > { %2806 = vmatprep.subr.bf16.mxu0 %v3004_v10 }
  0x32   : > { %2926 = vmatpush3.bf16.msra.mxu1 %v3010_v9 }
  0x34   : > { %2807 = vmatpush3.bf16.msra.mxu0 %v3004_v10 }
  0x35   : > { %2644 = vmatprep.subr.bf16.mxu0 %v3005_v1 }
  0x37   : > { %2809 = vmatmul.mubr.bf16.vlgmr.msra.gmra.mrb[0].mxu0 %v335_v15  ;;  %v3011_v15 = vld [vmem:[%s4704_s3 + $0x58] sm:$0xff]  }
  0x38   : > { %2812 = vmatprep.mubr.bf16.mxu0 %v336_v16  ;;  %2645 = vmatpush3.bf16.msra.mxu0 %v3006_v2 }
  0x39   : > { %2646 = vmatprep.subr.bf16.mxu0 %v3007_v4  ;;  %2919 = vmatprep.subr.bf16.mxu1 %v3011_v15 }
  0x3a   : > { %2927 = vmatpush3.bf16.msra.mxu1 %v3012_v25 }
  0x3b   : > { %2920 = vmatprep.subr.bf16.mxu1 %v3013_v30 }
  0x3c   : > { %2647 = vmatpush3.bf16.msra.mxu0 %v3008_v5 }
  0x3d   : > { %2648 = vmatprep.subr.bf16.mxu0 %v3009_v6 }
  0x3f   : > { %2813 = vmatmul.mubr.bf16.gmra.mrb[4].mxu0 %v337_v21  ;;  %v3141_v21 = vmov 0.0  }
  0x40   : > { %2816 = vmatprep.mubr.bf16.mxu0 %v338_v22  ;;  %2649 = vmatpush3.bf16.msra.mxu0 %v3010_v9  ;;  %v3347_v22 = vrot.slane %v3141_v21, 1  ;;  %v3350_v24 = vrot.slane %v3141_v21, 7 }
  0x41   : > { %2650 = vmatprep.subr.bf16.mxu0 %v3011_v15 }
  0x42   : > { %4740 = vst [vmem:[#allocation5_spill] sm:$0xff] %v3350_v24 }
  0x44   : > { %2651 = vmatpush3.bf16.msra.mxu0 %v3012_v25 }
  0x45   : > { %2652 = vmatprep.subr.bf16.mxu0 %v3013_v30 }
  0x47   : > { %2817 = vmatmul.mubr.bf16.gmra.mrb[8].mxu0 %v339_v27 }
  0x48   : > { %2820 = vmatprep.mubr.bf16.mxu0 %v340_v28 }
  0x4f   : > { %2821 = vmatmul.mubr.bf16.gmra.mrb[12].mxu0 %v341_v33 }
  0x50   : > { %2824 = vmatprep.mubr.bf16.mxu0 %v342_v34 }
  0x57   : > { %2825 = vmatmul.mubr.bf16.gmra.mrb[16].mxu0 %v343_v39  ;;  %v3014_v39 = vld [vmem:[%s4704_s3 + $0x20] sm:$0xff]  }
  0x58   : > { %2828 = vmatprep.mubr.bf16.mxu0 %v344_v40  ;;  %2653 = vmatpush3.bf16.msra.mxu0 %v3014_v39 }
  0x59   : > { %2928 = vmatpush3.bf16.msra.mxu1 %v3014_v39 }
  0x5f   : > { %2829 = vmatmul.mubr.bf16.gmra.mrb[20].mxu0 %v345_v45  ;;  %v3015_v45 = vld [vmem:[%s4704_s3 + $0x68] sm:$0xff]  }
  0x60   : > { %2832 = vmatprep.mubr.bf16.mxu0 %v346_v46  ;;  %2654 = vmatprep.subr.bf16.mxu0 %v3015_v45 }
  0x61   : > { %2921 = vmatprep.subr.bf16.mxu1 %v3015_v45  ;;  %2655 = vmatpush3.bf16.msra.mxu0 %v3016_v56 }
  0x62   : > { %2929 = vmatpush3.bf16.msra.mxu1 %v3016_v56 }
  0x67   : > { %2833 = vmatmul.mubr.bf16.gmra.mrb[24].mxu0 %v347_v51 }
  0x68   : > { %2836 = vmatprep.mubr.bf16.mxu0 %v348_v52 }
  0x6f   : > { %2837 = vmatmul.mubr.bf16.gmra.mrb[28].mxu0 %v349_v57 }
  0x70   : > { %2840 = vmatprep.mubr.bf16.mxu0 %v350_v58  ;;  %v3017_v58 = vld [vmem:[%s4704_s3 + $0x70] sm:$0xff]  }
  0x71   : > { %2656 = vmatprep.subr.bf16.mxu0 %v3017_v58  ;;  %2922 = vmatprep.subr.bf16.mxu1 %v3017_v58 }
  0x77   : > { %2841 = vmatmul.mubr.bf16.gmra.mrb[32].mxu0 %v351_v61 }
 0x10a   : > { %v2810_v8 = vpop.f32.mrb[0].mxu0 }
 0x10b   : > { %v466_v10 = vadd.f32 %v2810_v8, %v3332_v7  ;;  %v457_v11 = vpop.f32.mrb[1].mxu0 }
 0x10c   : > { %v2811_v16 = vpop.f32.mrb[2].mxu0 }
 0x10d   : > { %v602_v18 = vmax.f32 %v466_v10, 0.0  ;;  %v469_v19 = vadd.f32 %v2811_v16, %v3332_v7  ;;  %v460_v20 = vpop.f32.mrb[3].mxu0  ;;  %v3018_v10 = vld [vmem:[%s4704_s3 + $0x30] sm:$0xff]   ;;  %v3019_v16 = vld [vmem:[%s4704_s3 + $0x78] sm:$0xff]  }
 0x10e   : > { %2657 = vmatpush3.bf16.msra.mxu0 %v3018_v10  ;;  %2930 = vmatpush3.bf16.msra.mxu1 %v3018_v10 }
 0x10f   : > { %v783_v26 = vrot.slane %v602_v18, 7  ;;  %v858_v27 = vrot.slane %v602_v18, 1  ;;  %v3355_v28 = vmax.f32 %v469_v19, 0.0  ;;  %2658 = vmatprep.subr.bf16.mxu0 %v3019_v16  ;;  %2923 = vmatprep.subr.bf16.mxu1 %v3019_v16 }
 0x111   : > { %v784_v31 = vrot.slane %v3355_v28, 7  ;;  %v859_v32 = vrot.slane %v3355_v28, 1  ;;  %v3366_v33 = vpack.c.bf16 %v3355_v28, %v602_v18  ;;  %v926_v34 = vsel %vm892_vm6, %v3347_v22, %v858_v27 }
 0x112   : > { %v2814_v35 = vpop.f32.mrb[4].mxu0  ;;  %v1000_v36 = vpack.c.bf16 %v926_v34, %v3347_v22  ;;  %v853_v43 = vsel %vm819_vm7, %v3350_v24, %v783_v26 }
 0x113   : > { %4741 = vst [vmem:[#allocation6_spill] sm:$0xff] %v3366_v33  ;;  %v482_v40 = vadd.f32 %v2814_v35, %v3332_v7  ;;  %1066 = vrot.lane.b32.xlu1 %v3366_v33, %s3138_s23  ;;  %v473_v41 = vpop.f32.mrb[5].mxu0  ;;  %v852_v42 = vsel %vm819_vm7, %v783_v26, %v784_v31  ;;  %v3389_v44 = vsel %vm892_vm6, %v858_v27, %v859_v32 }
 0x114   : > { %v474_v46 = vadd.f32 %v3332_v7, %v473_v41  ;;  %v2815_v47 = vpop.f32.mrb[6].mxu0  ;;  %v933_v48 = vpack.c.bf16 %v852_v42, %v853_v43  ;;  %v1030_v54 = vsel %vm3372_vm8, 0, %v1000_v36 }
 0x115   : > { %v3395_v49 = vmax.f32 %v482_v40, 0.0  ;;  %v485_v50 = vadd.f32 %v2815_v47, %v3332_v7  ;;  %v476_v51 = vpop.f32.mrb[7].mxu0 }
 0x116   : > { %v604_v52 = vmax.f32 %v474_v46, 0.0  ;;  %v477_v53 = vadd.f32 %v3332_v7, %v476_v51  ;;  %v3418_v2 = vsel %vm3401_vm9, 0, %v933_v48 }
 0x117   : > { %v3408_v57 = vmax.f32 %v485_v50, 0.0  ;;  %1112 = vrot.lane.b32.xlu1 %v1030_v54, %s3142_s16  ;;  %v862_v63 = vrot.slane %v3395_v49, 1  ;;  %4746 = vst [vmem:[#allocation7_spill] sm:$0xff] %v3418_v2  ;;  %v787_v11 = vrot.slane %v3395_v49, 7 }
 0x118   : > { %v785_v59 = vrot.slane %v604_v52, 7  ;;  %v860_v60 = vrot.slane %v604_v52, 1  ;;  %v605_v61 = vmax.f32 %v477_v53, 0.0 }
 0x119   : > { %v788_v1 = vrot.slane %v3408_v57, 7  ;;  %v3422_v3 = vpack.c.bf16 %v3408_v57, %v3395_v49  ;;  %v863_v34 = vrot.slane %v3408_v57, 1 }
 0x11a   : > { %v786_v4 = vrot.slane %v605_v61, 7  ;;  %v861_v5 = vrot.slane %v605_v61, 1  ;;  %v2818_v6 = vpop.f32.mrb[8].mxu0  ;;  %v3424_v8 = vpack.c.bf16 %v605_v61, %v604_v52  ;;  %v924_v9 = vsel %vm892_vm6, %v859_v32, %v860_v60  ;;  %v3020_v32 = vld [vmem:[%s4704_s3 + $0x38] sm:$0xff]  }
 0x11b   : > { %4747 = vst [vmem:[#allocation8_spill] sm:$0xff] %v3422_v3  ;;  %v498_v12 = vadd.f32 %v2818_v6, %v3332_v7  ;;  %1160 = vrot.lane.b32.xlu1 %v3418_v2, %s3143_s21  ;;  %1070 = vrot.lane.b32.xlu0 %v3422_v3, %s3138_s23  ;;  %v489_v13 = vpop.f32.mrb[9].mxu0  ;;  %v1001_v14 = vpack.c.bf16 %v924_v9, %v3389_v44 }
 0x11c   : > { %4748 = vst [vmem:[#allocation9_spill] sm:$0xff] %v3424_v8  ;;  %v851_v15 = vsel %vm819_vm7, %v784_v31, %v785_v59  ;;  %v490_v17 = vadd.f32 %v3332_v7, %v489_v13  ;;  %v2819_v18 = vpop.f32.mrb[10].mxu0  ;;  %v850_v19 = vsel %vm819_vm7, %v785_v59, %v786_v4  ;;  %v3450_v20 = vsel %vm892_vm6, %v861_v5, %v862_v63 }
 0x11d   : > { %v3454_v21 = vsel %vm892_vm6, %v860_v60, %v861_v5  ;;  %v3456_v23 = vmax.f32 %v498_v12, 0.0  ;;  %v501_v25 = vadd.f32 %v2819_v18, %v3332_v7  ;;  %v492_v26 = vpop.f32.mrb[11].mxu0  ;;  %v934_v27 = vpack.c.bf16 %v850_v19, %v851_v15  ;;  %2659 = vmatpush3.bf16.msra.mxu0 %v3020_v32  ;;  %2931 = vmatpush3.bf16.msra.mxu1 %v3020_v32 }
 0x11e   : > { %v608_v28 = vmax.f32 %v490_v17, 0.0  ;;  %v493_v29 = vadd.f32 %v3332_v7, %v492_v26  ;;  %v1002_v30 = vpack.c.bf16 %v3450_v20, %v3454_v21  ;;  %v848_v31 = vsel %vm819_vm7, %v787_v11, %v788_v1 }
 0x11f   : > { %v3470_v35 = vmax.f32 %v501_v25, 0.0  ;;  %1262 = vrot.lane.b32.xlu0 %v3422_v3, %s3143_s21  ;;  %1068 = vrot.lane.b32.xlu1 %v3424_v8, %s3138_s23  ;;  %v791_v36 = vrot.slane %v3456_v23, 7  ;;  %v1031_v41 = vsel %vm3372_vm8, 0, %v1001_v14  ;;  %v849_v42 = vsel %vm819_vm7, %v786_v4, %v787_v11 }
 0x120   : > { %v864_v38 = vrot.slane %v608_v28, 1  ;;  %v609_v39 = vmax.f32 %v493_v29, 0.0  ;;  %v866_v44 = vrot.slane %v3456_v23, 1  ;;  %v935_v47 = vpack.c.bf16 %v848_v31, %v849_v42 }
 0x121   : > { %v792_v40 = vrot.slane %v3470_v35, 7  ;;  %v3484_v43 = vpack.c.bf16 %v3470_v35, %v3456_v23  ;;  %v789_v50 = vrot.slane %v608_v28, 7  ;;  %v3501_v54 = vsel %vm892_vm6, %v862_v63, %v863_v34 }
 0x122   : > { %v790_v45 = vrot.slane %v609_v39, 7  ;;  %v2822_v46 = vpop.f32.mrb[12].mxu0  ;;  %v3487_v48 = vpack.c.bf16 %v609_v39, %v608_v28  ;;  %v3495_v53 = vsel %vm892_vm6, %v863_v34, %v864_v38  ;;  %v865_v56 = vrot.slane %v609_v39, 1 }
 0x123   : > { %4749 = vst [vmem:[#allocation10_spill] sm:$0xff] %v3484_v43  ;;  %1260 = vrot.lane.b32.xlu0 %v3424_v8, %s3143_s21  ;;  %1114 = vrot.lane.b32.xlu1 %v1031_v41, %s3142_s16  ;;  %v514_v51 = vadd.f32 %v2822_v46, %v3332_v7  ;;  %v505_v52 = vpop.f32.mrb[13].mxu0  ;;  %v1003_v60 = vpack.c.bf16 %v3495_v53, %v3501_v54  ;;  %v3525_v9 = vsel %vm3401_vm9, 0, %v934_v27  ;;  %v867_v15 = vrot.slane %v3470_v35, 1 }
 0x124   : > { %4750 = vst [vmem:[#allocation11_spill] sm:$0xff] %v3487_v48  ;;  %v506_v58 = vadd.f32 %v3332_v7, %v505_v52  ;;  %v2823_v59 = vpop.f32.mrb[14].mxu0  ;;  %v3510_v61 = vsel %vm819_vm7, %v791_v36, %v792_v40  ;;  %v3517_v63 = vsel %vm819_vm7, %v790_v45, %v791_v36  ;;  %v3521_v6 = vsel %vm819_vm7, %v789_v50, %v790_v45 }
 0x125   : > { %v3512_v4 = vmax.f32 %v514_v51, 0.0  ;;  %v517_v49 = vadd.f32 %v2823_v59, %v3332_v7  ;;  %v508_v5 = vpop.f32.mrb[15].mxu0  ;;  %4751 = vst [vmem:[#allocation12_spill] sm:$0xff] %v3525_v9  ;;  %v937_v12 = vpack.c.bf16 %v3510_v61, %v3517_v63  ;;  %v3539_v14 = vsel %vm819_vm7, %v788_v1, %v789_v50 }
 0x126   : > { %v612_v10 = vmax.f32 %v506_v58, 0.0  ;;  %v509_v11 = vadd.f32 %v3332_v7, %v508_v5  ;;  %v3545_v20 = vsel %vm3372_vm8, 0, %v1002_v30  ;;  %v3551_v57 = vsel %vm892_vm6, %v865_v56, %v866_v44 }
 0x127   : > { %1193 = vrot.lane.b32.xlu0 %v1031_v41, %s3138_s23  ;;  %1162 = vrot.lane.b32.xlu1 %v3525_v9, %s3143_s21  ;;  %v3533_v13 = vmax.f32 %v517_v49, 0.0  ;;  %v870_v19 = vrot.slane %v3512_v4, 1  ;;  %4752 = vst [vmem:[#allocation13_spill] sm:$0xff] %v3545_v20  ;;  %v3555_v26 = vsel %vm892_vm6, %v864_v38, %v865_v56  ;;  %v3567_v28 = vsel %vm3401_vm9, 0, %v935_v47 }
 0x128   : > { %v793_v16 = vrot.slane %v612_v10, 7  ;;  %v868_v17 = vrot.slane %v612_v10, 1  ;;  %v613_v18 = vmax.f32 %v509_v11, 0.0  ;;  %4754 = vst [vmem:[#allocation15_spill] sm:$0xff] %v3567_v28  ;;  %v3581_v39 = vsel %vm892_vm6, %v866_v44, %v867_v15 }
 0x129   : > { %v3559_v27 = vpack.c.bf16 %v3533_v13, %v3512_v4  ;;  %v795_v42 = vrot.slane %v3512_v4, 7  ;;  %v796_v45 = vrot.slane %v3533_v13, 7 }
 0x12a   : > { %v794_v1 = vrot.slane %v613_v18, 7  ;;  %v869_v23 = vrot.slane %v613_v18, 1  ;;  %v2826_v25 = vpop.f32.mrb[16].mxu0  ;;  %v3572_v32 = vpack.c.bf16 %v613_v18, %v612_v10  ;;  %v3577_v38 = vsel %vm892_vm6, %v867_v15, %v868_v17 }
 0x12b   : > { %4753 = vst [vmem:[#allocation14_spill] sm:$0xff] %v3559_v27  ;;  %1116 = vrot.lane.b32.xlu1 %v3545_v20, %s3142_s16  ;;  %1226 = vrot.lane.b32.xlu0 %v3525_v9, %s3142_s16  ;;  %v530_v29 = vadd.f32 %v2826_v25, %v3332_v7  ;;  %v521_v30 = vpop.f32.mrb[17].mxu0  ;;  %v3597_v44 = vsel %vm819_vm7, %v792_v40, %v793_v16  ;;  %v871_v40 = vrot.slane %v3533_v13, 1 }
 0x12c   : > { %v522_v34 = vadd.f32 %v3332_v7, %v521_v30  ;;  %v2827_v36 = vpop.f32.mrb[18].mxu0  ;;  %v3585_v41 = vsel %vm819_vm7, %v793_v16, %v794_v1  ;;  %v3601_v56 = vsel %vm892_vm6, %v869_v23, %v870_v19  ;;  %v3616_v5 = vsel %vm892_vm6, %v868_v17, %v869_v23 }
 0x12d   : > { %v533_v46 = vadd.f32 %v2827_v36, %v3332_v7  ;;  %v524_v47 = vpop.f32.mrb[19].mxu0  ;;  %v3607_v58 = vmax.f32 %v530_v29, 0.0  ;;  %v3620_v10 = vsel %vm819_vm7, %v795_v42, %v796_v45  ;;  %v3631_v23 = vsel %vm819_vm7, %v794_v1, %v795_v42 }
 0x12e   : > { %v616_v51 = vmax.f32 %v522_v34, 0.0  ;;  %v525_v52 = vadd.f32 %v3332_v7, %v524_v47  ;;  %v3650_v42 = vsel %vm892_vm6, %v870_v19, %v871_v40 }
 0x12f   : > { %1164 = vrot.lane.b32.xlu1 %v3567_v28, %s3143_s21  ;;  %1195 = vrot.lane.b32.xlu0 %v3545_v20, %s3138_s23  ;;  %v3609_v59 = vmax.f32 %v533_v46, 0.0  ;;  %v874_v29 = vrot.slane %v3607_v58, 1 }
 0x130   : > { %v617_v4 = vmax.f32 %v525_v52, 0.0  ;;  %v872_v49 = vrot.slane %v616_v51, 1  ;;  %v797_v11 = vrot.slane %v616_v51, 7 }
 0x131   : > { %v3635_v25 = vpack.c.bf16 %v3609_v59, %v3607_v58 }
 0x132   : > { %v2830_v15 = vpop.f32.mrb[20].mxu0  ;;  %v798_v13 = vrot.slane %v617_v4, 7  ;;  %v3641_v46 = vpack.c.bf16 %v617_v4, %v616_v51  ;;  %v873_v47 = vrot.slane %v617_v4, 1  ;;  %v3646_v1 = vsel %vm892_vm6, %v871_v40, %v872_v49 }
 0x133   : > { %1074 = vrot.lane.b32.xlu1 %v3484_v43, %s3138_s23  ;;  %1228 = vrot.lane.b32.xlu0 %v3567_v28, %s3142_s16  ;;  %v546_v18 = vadd.f32 %v2830_v15, %v3332_v7  ;;  %v537_v17 = vpop.f32.mrb[21].mxu0  ;;  %v799_v4 = vrot.slane %v3607_v58, 7  ;;  %v3680_v58 = vsel %vm819_vm7, %v796_v45, %v797_v11  ;;  %v875_v51 = vrot.slane %v3609_v59, 1 }
 0x134   : > { %v538_v30 = vadd.f32 %v3332_v7, %v537_v17  ;;  %v2831_v34 = vpop.f32.mrb[22].mxu0  ;;  %v3667_v19 = vsel %vm819_vm7, %v797_v11, %v798_v13  ;;  %v3692_v54 = vsel %vm892_vm6, %v872_v49, %v873_v47 }
 0x135   : > { %v549_v52 = vadd.f32 %v2831_v34, %v3332_v7  ;;  %v540_v15 = vpop.f32.mrb[23].mxu0  ;;  %v800_v34 = vrot.slane %v3609_v59, 7  ;;  %v3663_v36 = vmax.f32 %v546_v18, 0.0  ;;  %v3684_v18 = vsel %vm892_vm6, %v873_v47, %v874_v29 }
 0x136   : > { %v3652_v62 = vmax.f32 %v538_v30, 0.0  ;;  %v541_v17 = vadd.f32 %v3332_v7, %v540_v15  ;;  %v3676_v30 = vsel %vm3372_vm8, 0, %v1003_v60  ;;  %v3703_v60 = vsel %vm3401_vm9, 0, %v937_v12  ;;  %v3725_v12 = vld [vmem:[%s4704_s3 + $0x80] sm:$0xff]  }
 0x137   : > { %1072 = vrot.lane.b32.xlu1 %v3487_v48, %s3138_s23  ;;  %1266 = vrot.lane.b32.xlu0 %v3484_v43, %s3143_s21  ;;  %v3669_v40 = vmax.f32 %v549_v52, 0.0  ;;  %4755 = vst [vmem:[#allocation16_spill] sm:$0xff] %v3676_v30  ;;  %4756 = vst [vmem:[#allocation17_spill] sm:$0xff] %v3703_v60  ;;  %v3710_v11 = vsel %vm819_vm7, %v799_v4, %v800_v34  ;;  %v3716_v61 = vsel %vm819_vm7, %v798_v13, %v799_v4 }
 0x138   : > { %v621_v15 = vmax.f32 %v541_v17, 0.0  ;;  %v876_v52 = vrot.slane %v3652_v62, 1  ;;  %v801_v47 = vrot.slane %v3652_v62, 7  ;;  %4758 = vst [vmem:[#allocation19_spill] sm:$0xff] %v3725_v12  ;;  %2844 = vmatprep.subr.bf16.mxu0 %v3725_v12 }
 0x139   : > { %v3720_v63 = vpack.c.bf16 %v3669_v40, %v3663_v36  ;;  %v804_v43 = vrot.slane %v3669_v40, 7 }
 0x13a   : > { %v2834_v16 = vpop.f32.mrb[24].mxu0  ;;  %v802_v49 = vrot.slane %v621_v15, 7  ;;  %v877_v35 = vrot.slane %v621_v15, 1  ;;  %v3733_v31 = vpack.c.bf16 %v621_v15, %v3652_v62  ;;  %v3737_v21 = vsel %vm892_vm6, %v875_v51, %v876_v52 }
 0x13b   : > { %1118 = vrot.lane.b32.xlu1 %v3676_v30, %s3142_s16  ;;  %1264 = vrot.lane.b32.xlu0 %v3487_v48, %s3143_s21  ;;  %v553_v59 = vpop.f32.mrb[25].mxu0  ;;  %4757 = vst [vmem:[#allocation18_spill] sm:$0xff] %v3720_v63  ;;  %v562_v50 = vadd.f32 %v2834_v16, %v3332_v7  ;;  %v4759_v16 = vpack.c.bf16 %v3521_v6, %v3539_v14  ;;  %v879_v6 = vrot.slane %v3669_v40, 1 }
 0x13c   : > { %v554_v17 = vadd.f32 %v3332_v7, %v553_v59  ;;  %v2835_v53 = vpop.f32.mrb[26].mxu0  ;;  %v4761_v15 = vpack.c.bf16 %v3551_v57, %v3555_v26  ;;  %v803_v59 = vrot.slane %v3663_v36, 7  ;;  %v3771_v57 = vsel %vm819_vm7, %v801_v47, %v802_v49 }
 0x13d   : > { %v556_v45 = vpop.f32.mrb[27].mxu0  ;;  %v565_v13 = vadd.f32 %v2835_v53, %v3332_v7  ;;  %v3749_v53 = vsel %vm3401_vm9, 0, %v4759_v16  ;;  %v3765_v14 = vmax.f32 %v562_v50, 0.0  ;;  %v3777_v20 = vsel %vm819_vm7, %v800_v34, %v801_v47 }
 0x13e   : > { %v557_v4 = vadd.f32 %v3332_v7, %v556_v45  ;;  %4760 = vst [vmem:[#allocation20_spill] sm:$0xff] %v3749_v53  ;;  %v624_v62 = vmax.f32 %v554_v17, 0.0  ;;  %v3756_v45 = vsel %vm3372_vm8, 0, %v4761_v15  ;;  %v3794_v47 = vsel %vm892_vm6, %v876_v52, %v877_v35 }
 0x13f   : > { %1232 = vrot.lane.b32.xlu1 %v3703_v60, %s3142_s16  ;;  %1197 = vrot.lane.b32.xlu0 %v3676_v30, %s3138_s23  ;;  %4762 = vst [vmem:[#allocation21_spill] sm:$0xff] %v3756_v45  ;;  %v3762_v30 = vsel %vm892_vm6, %v874_v29, %v875_v51  ;;  %v3773_v26 = vmax.f32 %v565_v13, 0.0  ;;  %v4763_v29 = vrot.slane %v3663_v36, 1  ;;  %v3801_v9 = vsel %vm819_vm7, %v803_v59, %v804_v43 }
 0x140   : > { %v625_v16 = vmax.f32 %v557_v4, 0.0  ;;  %v805_v51 = vrot.slane %v624_v62, 7  ;;  %v880_v13 = vrot.slane %v624_v62, 1 }
 0x141   : > { %v3783_v50 = vsel %vm892_vm6, %v877_v35, %v4763_v29  ;;  %v3817_v2 = vpack.c.bf16 %v3773_v26, %v3765_v14 }
 0x142   : > { %v2838_v15 = vpop.f32.mrb[28].mxu0  ;;  %v806_v28 = vrot.slane %v625_v16, 7 }
 0x143   : > { %1166 = vrot.lane.b32.xlu1 %v3749_v53, %s3143_s21  ;;  %1199 = vrot.lane.b32.xlu0 %v3756_v45, %s3138_s23  ;;  %v578_v40 = vadd.f32 %v2838_v15, %v3332_v7  ;;  %v569_v34 = vpop.f32.mrb[29].mxu0  ;;  %v3805_v15 = vsel %vm819_vm7, %v802_v49, %v803_v59  ;;  %4764 = vst [vmem:[#allocation22_spill] sm:$0xff] %v3817_v2  ;;  %v807_v49 = vrot.slane %v3765_v14, 7  ;;  %v882_v59 = vrot.slane %v3765_v14, 1 }
 0x144   : > { %v570_v4 = vadd.f32 %v3332_v7, %v569_v34  ;;  %v2839_v29 = vpop.f32.mrb[30].mxu0  ;;  %v3827_v34 = vpack.c.bf16 %v625_v16, %v624_v62 }
 0x145   : > { %v3807_v3 = vmax.f32 %v578_v40, 0.0  ;;  %v581_v35 = vadd.f32 %v2839_v29, %v3332_v7  ;;  %v572_v52 = vpop.f32.mrb[31].mxu0  ;;  %v881_v40 = vrot.slane %v625_v16, 1  ;;  %v883_v29 = vrot.slane %v3773_v26, 1 }
 0x146   : > { %v3812_v48 = vmax.f32 %v570_v4, 0.0  ;;  %v573_v17 = vadd.f32 %v3332_v7, %v572_v52  ;;  %v808_v4 = vrot.slane %v3773_v26, 7  ;;  %4765 = vst [vmem:[#allocation23_spill] sm:$0xff] %v3827_v34  ;;  %v3846_v16 = vsel %vm819_vm7, %v805_v51, %v806_v28 }
 0x147   : > { %1120 = vrot.lane.b32.xlu1 %v3756_v45, %s3142_s16  ;;  %1230 = vrot.lane.b32.xlu0 %v3749_v53, %s3142_s16  ;;  %v886_v8 = vrot.slane %v3807_v3, 1  ;;  %v631_v12 = vmax.f32 %v581_v35, 0.0  ;;  %v3832_v45 = vsel %vm892_vm6, %v879_v6, %v880_v13  ;;  %v4767_v53 = vrot.slane %v3663_v36, 1 }
 0x148   : > { %v629_v52 = vmax.f32 %v573_v17, 0.0  ;;  %4766 = vst [vmem:[#allocation24_spill] sm:$0xff] %v3832_v45  ;;  %v809_v33 = vrot.slane %v3812_v48, 7  ;;  %v884_v26 = vrot.slane %v3812_v48, 1  ;;  %v3858_v35 = vsel %vm892_vm6, %v881_v40, %v882_v59 }
 0x149   : > { %v3838_v14 = vsel %vm892_vm6, %v4767_v53, %v879_v6  ;;  %v3854_v53 = vsel %vm819_vm7, %v804_v43, %v805_v51  ;;  %v3871_v34 = vsel %vm819_vm7, %v807_v49, %v808_v4  ;;  %v3875_v24 = vsel %vm819_vm7, %v806_v28, %v807_v49 }
 0x14a   : > { %4768 = vst [vmem:[#allocation25_spill] sm:$0xff] %v3838_v14  ;;  %v2842_v17 = vpop.f32.mrb[32].mxu0  ;;  %v810_v36 = vrot.slane %v629_v52, 7  ;;  %v885_v62 = vrot.slane %v629_v52, 1  ;;  %v3893_v49 = vsel %vm892_vm6, %v883_v29, %v884_v26  ;;  %v3909_v28 = vsel %vm819_vm7, %v808_v4, %v809_v33 }
 0x14b   : > { %1168 = vrot.lane.b32.xlu1 %v3703_v60, %s3143_s21  ;;  %1270 = vrot.lane.b32.xlu0 %v3559_v27, %s3143_s21  ;;  %v585_v6 = vpop.f32.mrb[33].mxu0  ;;  %v3862_v17 = vsel %vm892_vm6, %v880_v13, %v881_v40  ;;  %v3878_v13 = vpack.c.bf16 %v631_v12, %v3807_v3  ;;  %v3881_v40 = vpack.c.bf16 %v629_v52, %v3812_v48  ;;  %v812_v60 = vrot.slane %v631_v12, 7 }
 0x14c   : > { %v586_v14 = vadd.f32 %v3332_v7, %v585_v6  ;;  %v2843_v45 = vpop.f32.mrb[34].mxu0  ;;  %v887_v48 = vrot.slane %v631_v12, 1  ;;  %v4769_v12 = vpack.c.bf16 %v3577_v38, %v3581_v39  ;;  %v3932_v38 = vsel %vm892_vm6, %v884_v26, %v885_v62 }
 0x14d   : > { %v588_v51 = vpop.f32.mrb[35].mxu0  ;;  %v811_v45 = vrot.slane %v3807_v3, 7  ;;  %v3897_v3 = vsel %vm892_vm6, %v882_v59, %v883_v29  ;;  %v3913_v59 = vsel %vm892_vm6, %v885_v62, %v886_v8 }
 0x14e   : > { %v632_v6 = vmax.f32 %v586_v14, 0.0  ;;  %v589_v43 = vadd.f32 %v3332_v7, %v588_v51  ;;  %v3920_v29 = vsel %vm3372_vm8, 0, %v4769_v12  ;;  %v3955_v62 = vsel %vm892_vm6, %v886_v8, %v887_v48 }
 0x14f   : > { %1078 = vrot.lane.b32.xlu1 %v3559_v27, %s3138_s23  ;;  %1268 = vrot.lane.b32.xlu0 %v3572_v32, %s3143_s21  ;;  %v3905_v27 = vsel %vm819_vm7, %v809_v33, %v810_v36  ;;  %v3936_v39 = vsel %vm819_vm7, %v811_v45, %v812_v60  ;;  %v3940_v4 = vsel %vm819_vm7, %v810_v36, %v811_v45 }
 0x150   : > { %v813_v7 = vrot.slane %v632_v6, 7  ;;  %v3899_v52 = vmax.f32 %v589_v43, 0.0  ;;  %v888_v51 = vrot.slane %v632_v6, 1 }
 0x152   : > { %v889_v33 = vrot.slane %v3899_v52, 1  ;;  %v3947_v43 = vpack.c.bf16 %v3899_v52, %v632_v6  ;;  %v3951_v26 = vsel %vm892_vm6, %v887_v48, %v888_v51  ;;  %v4770_v36 = vrot.slane %v3899_v52, 7  ;;  %v4788_v48 = vld [vmem:[#allocation25_spill] sm:$0xff] }
 0x153   : > { %1076 = vrot.lane.b32.xlu1 %v3572_v32, %s3138_s23  ;;  %1201 = vrot.lane.b32.xlu0 %v3920_v29, %s3138_s23  ;;  %v3965_v14 = vsel %vm819_vm7, %v812_v60, %v813_v7  ;;  %v4771_v6 = vpack.c.bf16 %v3585_v41, %v3597_v44  ;;  %v4787_v60 = vld [vmem:[#allocation24_spill] sm:$0xff] }
 0x154   : > { %v3961_v45 = vsel %vm819_vm7, %v813_v7, %v4770_v36  ;;  %v3985_v41 = vsel %vm892_vm6, %v889_v33, %v3347_v22  ;;  %v3989_v44 = vsel %vm892_vm6, %v888_v51, %v889_v33  ;;  %v4772_v7 = vpack.c.bf16 %v3601_v56, %v3616_v5 }
 0x155   : > { %v3972_v12 = vsel %vm3401_vm9, 0, %v4771_v6  ;;  %v4773_v51 = vpack.c.bf16 %v3620_v10, %v3631_v23  ;;  %v4774_v56 = vpack.c.bf16 %v3646_v1, %v3650_v42  ;;  %v4775_v10 = vpack.c.bf16 %v3667_v19, %v3680_v58 }
 0x156   : > { %v3998_v36 = vsel %vm3372_vm8, 0, %v4772_v7  ;;  %v4776_v1 = vpack.c.bf16 %v3684_v18, %v3692_v54  ;;  %v4777_v19 = vpack.c.bf16 %v3710_v11, %v3716_v61  ;;  %v1065_v18 = vpop.permute.xlu1 %1064  ;;  %v4779_v54 = vpack.c.bf16 %v3737_v21, %v3762_v30 }
 0x157   : > { %1122 = vrot.lane.b32.xlu1 %v3920_v29, %s3142_s16  ;;  %1234 = vrot.lane.b32.xlu0 %v3972_v12, %s3142_s16  ;;  %v4009_v33 = vsel %vm3401_vm9, 0, %v4773_v51  ;;  %v4028_v5 = vsel %vm3372_vm8, 0, %v4774_v56  ;;  %v4039_v23 = vsel %vm3401_vm9, 0, %v4775_v10  ;;  %v4780_v6 = vpack.c.bf16 %v3771_v57, %v3777_v20 }
 0x158   : > { %v4050_v42 = vsel %vm3372_vm8, 0, %v4776_v1  ;;  %v4061_v58 = vsel %vm3401_vm9, 0, %v4777_v19  ;;  %v4080_v11 = vsel %vm3372_vm8, 0, %v4779_v54  ;;  %v4782_v30 = vpack.c.bf16 %v3783_v50, %v3794_v47  ;;  %v4786_v54 = vld [vmem:[#allocation23_spill] sm:$0xff] }
 0x159   : > { %4778 = vst [vmem:[#allocation26_spill] sm:$0xff] %v4061_v58  ;;  %v4091_v7 = vsel %vm3401_vm9, 0, %v4780_v6  ;;  %v4783_v56 = vpack.c.bf16 %v3801_v9, %v3805_v15  ;;  %v4785_v9 = vld [vmem:[#allocation5_spill] sm:$0xff]  ;;  %v4789_v8 = vpack.c.bf16 %v4787_v60, %v4788_v48  ;;  %v4791_v60 = vpack.c.bf16 %v3846_v16, %v3854_v53  ;;  %v3022_v16 = vld [vmem:[%s4704_s3 + $0x88] sm:$0xff]  }
 0x15a   : > { %4781 = vst [vmem:[#allocation27_spill] sm:$0xff] %v4091_v7  ;;  %v4102_v51 = vsel %vm3372_vm8, 0, %v4782_v30  ;;  %v932_v15 = vpack.c.bf16 %v4785_v9, %v4785_v9 }
 0x15b   : > { %1170 = vrot.lane.b32.xlu1 %v3972_v12, %s3143_s21  ;;  %1203 = vrot.lane.b32.xlu0 %v3998_v36, %s3138_s23  ;;  %v4115_v10 = vsel %vm3401_vm9, 0, %v4783_v56 }
 0x15c   : > { %4784 = vst [vmem:[#allocation28_spill] sm:$0xff] %v4115_v10  ;;  %v962_v6 = vsel %vm3401_vm9, 0, %v932_v15  ;;  %v4790_v15 = vld [vmem:[#allocation6_spill] sm:$0xff] }
 0x15f   : > { %1124 = vrot.lane.b32.xlu1 %v3998_v36, %s3142_s16  ;;  %1236 = vrot.lane.b32.xlu0 %v4009_v33, %s3142_s16 }
 0x163   : > { %1172 = vrot.lane.b32.xlu1 %v4009_v33, %s3143_s21  ;;  %1274 = vrot.lane.b32.xlu0 %v3635_v25, %s3143_s21 }
 0x167   : > { %1082 = vrot.lane.b32.xlu1 %v3635_v25, %s3138_s23  ;;  %1272 = vrot.lane.b32.xlu0 %v3641_v46, %s3143_s21 }
 0x16b   : > { %1080 = vrot.lane.b32.xlu1 %v3641_v46, %s3138_s23  ;;  %1205 = vrot.lane.b32.xlu0 %v4028_v5, %s3138_s23 }
 0x16f   : > { %1126 = vrot.lane.b32.xlu1 %v4028_v5, %s3142_s16  ;;  %1238 = vrot.lane.b32.xlu0 %v4039_v23, %s3142_s16 }
 0x173   : > { %1174 = vrot.lane.b32.xlu1 %v4039_v23, %s3143_s21  ;;  %1207 = vrot.lane.b32.xlu0 %v4050_v42, %s3138_s23 }
 0x177   : > { %1128 = vrot.lane.b32.xlu1 %v4050_v42, %s3142_s16  ;;  %1240 = vrot.lane.b32.xlu0 %v4061_v58, %s3142_s16 }
 0x17b   : > { %1176 = vrot.lane.b32.xlu1 %v4061_v58, %s3143_s21  ;;  %1278 = vrot.lane.b32.xlu0 %v3720_v63, %s3143_s21 }
 0x17f   : > { %1086 = vrot.lane.b32.xlu1 %v3720_v63, %s3138_s23  ;;  %1276 = vrot.lane.b32.xlu0 %v3733_v31, %s3143_s21 }
 0x183   : > { %1084 = vrot.lane.b32.xlu1 %v3733_v31, %s3138_s23  ;;  %1209 = vrot.lane.b32.xlu0 %v4080_v11, %s3138_s23 }
 0x185   : > { %v1067_v61 = vpop.permute.xlu1 %1066 }
 0x187   : > { %1130 = vrot.lane.b32.xlu1 %v4080_v11, %s3142_s16  ;;  %1242 = vrot.lane.b32.xlu0 %v4091_v7, %s3142_s16 }
 0x189   : > { %v1113_v21 = vpop.permute.xlu1 %1112 }
 0x18b   : > { %1178 = vrot.lane.b32.xlu1 %v4091_v7, %s3143_s21  ;;  %1211 = vrot.lane.b32.xlu0 %v4102_v51, %s3138_s23 }
 0x18d   : > { %v1161_v20 = vpop.permute.xlu1 %1160  ;;  %v4108_v57 = vpop.permute.xlu0 %1070 }
 0x18f   : > { %1132 = vrot.lane.b32.xlu1 %v4102_v51, %s3142_s16  ;;  %1244 = vrot.lane.b32.xlu0 %v4115_v10, %s3142_s16 }
 0x191   : > { %v1263_v50 = vpop.permute.xlu0 %1262  ;;  %v4121_v47 = vpop.permute.xlu1 %1068 }
 0x193   : > { %1180 = vrot.lane.b32.xlu1 %v4115_v10, %s3143_s21  ;;  %1282 = vrot.lane.b32.xlu0 %v3817_v2, %s3143_s21  ;;  %v4140_v10 = vsel %vm3372_vm8, 0, %v4789_v8 }
 0x195   : > { %v1261_v1 = vpop.permute.xlu0 %1260  ;;  %v1115_v19 = vpop.permute.xlu1 %1114 }
 0x197   : > { %1090 = vrot.lane.b32.xlu1 %v3817_v2, %s3138_s23  ;;  %1280 = vrot.lane.b32.xlu0 %v4786_v54, %s3143_s21  ;;  %v1295_v2 = vsel %vm1292_vm10, %v962_v6, %v1065_v18 }
 0x198   : > { %v1343_v58 = vsel %vm1341_vm11, %v1295_v2, %v1113_v21  ;;  %v4792_v2 = vpack.c.bf16 %v3858_v35, %v3862_v17  ;;  %v4795_v35 = vld [vmem:[#allocation7_spill] sm:$0xff] }
 0x199   : > { %v1194_v30 = vpop.permute.xlu0 %1193  ;;  %v1163_v56 = vpop.permute.xlu1 %1162  ;;  %v1376_v6 = vsel %vm1374_vm12, %v1343_v58, %v1161_v20  ;;  %v4794_v58 = vld [vmem:[#allocation9_spill] sm:$0xff]  ;;  %v1298_v17 = vsel %vm1292_vm10, %v4795_v35, %v1067_v61  ;;  %v4799_v35 = vpack.c.bf16 %v3905_v27, %v3909_v28  ;;  %v4801_v28 = vld [vmem:[#allocation8_spill] sm:$0xff] }
 0x19a   : > { %v1425_v7 = vsel %vm1292_vm10, %v4790_v15, %v1194_v30  ;;  %v4174_v21 = vsel %vm3372_vm8, 0, %v4792_v2  ;;  %v4793_v30 = vld [vmem:[#allocation19_spill] sm:$0xff] }
 0x19b   : > { %1088 = vrot.lane.b32.xlu1 %v4786_v54, %s3138_s23  ;;  %1213 = vrot.lane.b32.xlu0 %v4140_v10, %s3138_s23  ;;  %v4157_v54 = vsel %vm3401_vm9, 0, %v4791_v60 }
 0x19d   : > { %v4149_v63 = vpop.permute.xlu1 %1116  ;;  %v1227_v48 = vpop.permute.xlu0 %1226 }
 0x19e   : > { %v1472_v8 = vsel %vm1341_vm11, %v1425_v7, %v1227_v48 }
 0x19f   : > { %1134 = vrot.lane.b32.xlu1 %v4140_v10, %s3142_s16  ;;  %1246 = vrot.lane.b32.xlu0 %v4157_v54, %s3142_s16  ;;  %v1504_v18 = vsel %vm1374_vm12, %v1472_v8, %v1261_v1  ;;  %v4796_v8 = vpack.c.bf16 %v3871_v34, %v3875_v24 }
 0x1a0   : > { %1782 = vmatprep.mubr.bf16.mxu0 %v1504_v18  ;;  %v1345_v18 = vsel %vm1341_vm11, %v1298_v17, %v1115_v19 }
 0x1a1   : > { %v1165_v53 = vpop.permute.xlu1 %1164  ;;  %1783 = vmatmul.mubr.bf16.vlgmr.msra.gmra.mrb[36].mxu0 %v1376_v6  ;;  %v1196_v7 = vpop.permute.xlu0 %1195  ;;  %v4193_v60 = vsel %vm3401_vm9, 0, %v4796_v8  ;;  %v1379_v6 = vsel %vm1374_vm12, %v1345_v18, %v1163_v56  ;;  %v4797_v56 = vpack.c.bf16 %v3893_v49, %v3897_v3  ;;  %v4228_v49 = vsel %vm3401_vm9, 0, %v4799_v35  ;;  %v4800_v3 = vld [vmem:[#allocation15_spill] sm:$0xff]  ;;  %v4806_v35 = vld [vmem:[#allocation16_spill] sm:$0xff] }
 0x1a2   : > { %2845 = vmatpush3.bf16.msra.mxu0 %v4793_v30  ;;  %v1428_v20 = vsel %vm1292_vm10, %v4794_v58, %v1196_v7  ;;  %v1304_v17 = vsel %vm1292_vm10, %v4800_v3, %v4108_v57  ;;  %v4807_v3 = vld [vmem:[#allocation21_spill] sm:$0xff] }
 0x1a3   : > { %1182 = vrot.lane.b32.xlu1 %v4157_v54, %s3143_s21  ;;  %1215 = vrot.lane.b32.xlu0 %v4174_v21, %s3138_s23  ;;  %v4215_v2 = vsel %vm3372_vm8, 0, %v4797_v56  ;;  %v4802_v56 = vld [vmem:[#allocation12_spill] sm:$0xff] }
 0x1a4   : > { %2846 = vmatprep.subr.bf16.mxu0 %v3022_v16 }
 0x1a5   : > { %v4183_v1 = vpop.permute.xlu1 %1074  ;;  %v1229_v15 = vpop.permute.xlu0 %1228 }
 0x1a6   : > { %v1474_v48 = vsel %vm1341_vm11, %v1428_v20, %v1229_v15  ;;  %2847 = vmatpush3.bf16.msra.mxu0 %v3022_v16  ;;  %v4798_v20 = vld [vmem:[#allocation11_spill] sm:$0xff] }
 0x1a7   : > { %1136 = vrot.lane.b32.xlu1 %v4174_v21, %s3142_s16  ;;  %1248 = vrot.lane.b32.xlu0 %v4193_v60, %s3142_s16  ;;  %v1507_v61 = vsel %vm1374_vm12, %v1474_v48, %v1263_v50 }
 0x1a8   : > { %1790 = vmatprep.mubr.bf16.mxu0 %v1507_v61 }
 0x1a9   : > { %v1073_v7 = vpop.permute.xlu1 %1072  ;;  %1791 = vmatmul.mubr.bf16.gmra.mrb[40].mxu0 %v1379_v6  ;;  %v1267_v24 = vpop.permute.xlu0 %1266 }
 0x1ab   : > { %1184 = vrot.lane.b32.xlu1 %v4193_v60, %s3143_s21  ;;  %1286 = vrot.lane.b32.xlu0 %v3878_v13, %s3143_s21 }
 0x1ad   : > { %v1119_v34 = vpop.permute.xlu1 %1118  ;;  %v1265_v19 = vpop.permute.xlu0 %1264 }
 0x1ae   : > { %v1349_v8 = vsel %vm1341_vm11, %v1304_v17, %v1119_v34  ;;  %v4803_v34 = vpack.c.bf16 %v3913_v59, %v3932_v38  ;;  %v4804_v38 = vld [vmem:[#allocation13_spill] sm:$0xff]  ;;  %v4808_v17 = vpack.c.bf16 %v3951_v26, %v3955_v62  ;;  %v4811_v62 = vpack.c.bf16 %v3961_v45, %v3965_v14 }
 0x1af   : > { %1094 = vrot.lane.b32.xlu1 %v3878_v13, %s3138_s23  ;;  %1284 = vrot.lane.b32.xlu0 %v3881_v40, %s3143_s21 }
 0x1b1   : > { %v1233_v50 = vpop.permute.xlu1 %1232  ;;  %v1198_v16 = vpop.permute.xlu0 %1197 }
 0x1b2   : > { %v1431_v18 = vsel %vm1292_vm10, %v4801_v28, %v1198_v16 }
 0x1b3   : > { %1092 = vrot.lane.b32.xlu1 %v3881_v40, %s3138_s23  ;;  %1217 = vrot.lane.b32.xlu0 %v4215_v2, %s3138_s23 }
 0x1b5   : > { %v1167_v30 = vpop.permute.xlu1 %1166  ;;  %v1200_v58 = vpop.permute.xlu0 %1199 }
 0x1b6   : > { %v1434_v15 = vsel %vm1292_vm10, %v4798_v20, %v1200_v58  ;;  %v1385_v57 = vsel %vm1374_vm12, %v1349_v8, %v1167_v30  ;;  %v1301_v58 = vsel %vm1292_vm10, %v4802_v56, %v4121_v47  ;;  %v4809_v8 = vld [vmem:[#allocation10_spill] sm:$0xff]  ;;  %v978_v56 = vsel %vm3401_vm9, 0, %v4811_v62 }
 0x1b7   : > { %1138 = vrot.lane.b32.xlu1 %v4215_v2, %s3142_s16  ;;  %1250 = vrot.lane.b32.xlu0 %v4228_v49, %s3142_s16  ;;  %v1478_v48 = vsel %vm1341_vm11, %v1434_v15, %v1233_v50  ;;  %v1347_v50 = vsel %vm1341_vm11, %v1301_v58, %v4149_v63  ;;  %v4805_v63 = vpack.c.bf16 %v3936_v39, %v3940_v4 }
 0x1b8   : > { %v1513_v27 = vsel %vm1374_vm12, %v1478_v48, %v1267_v24  ;;  %v4252_v24 = vsel %vm3372_vm8, 0, %v4803_v34  ;;  %v1382_v16 = vsel %vm1374_vm12, %v1347_v50, %v1165_v53  ;;  %v4290_v48 = vsel %vm3372_vm8, 0, %v4808_v17 }
 0x1b9   : > { %v1121_v61 = vpop.permute.xlu1 %1120  ;;  %1806 = vmatprep.mubr.bf16.mxu1 %v1513_v27  ;;  %v1231_v6 = vpop.permute.xlu0 %1230  ;;  %v4269_v15 = vsel %vm3401_vm9, 0, %v4805_v63  ;;  %v4812_v34 = vrot.slane %v3899_v52, 7 }
 0x1ba   : > { %v1476_v20 = vsel %vm1341_vm11, %v1431_v18, %v1231_v6  ;;  %1807 = vmatmul.mubr.bf16.vlgmr.msra.gmra.mrb[0].mxu1 %v1385_v57  ;;  %v4810_v6 = vld [vmem:[#allocation20_spill] sm:$0xff] }
 0x1bb   : > { %1186 = vrot.lane.b32.xlu1 %v4228_v49, %s3143_s21  ;;  %1219 = vrot.lane.b32.xlu0 %v4252_v24, %s3138_s23  ;;  %v1510_v47 = vsel %vm1374_vm12, %v1476_v20, %v1265_v19  ;;  %v1307_v57 = vsel %vm1292_vm10, %v4810_v6, %v1073_v7  ;;  %v821_v7 = vsel %vm819_vm7, %v4812_v34, %v4785_v9 }
 0x1bc   : > { %1798 = vmatprep.mubr.bf16.mxu0 %v1510_v47  ;;  %v1351_v58 = vsel %vm1341_vm11, %v1307_v57, %v1121_v61  ;;  %v4813_v61 = vpack.c.bf16 %v3985_v41, %v3989_v44  ;;  %v949_v0 = vpack.c.bf16 %v4785_v9, %v821_v7  ;;  %v1017_v7 = vpack.c.bf16 %v3347_v22, %v3347_v22 }
 0x1bd   : > { %v1169_v30 = vpop.permute.xlu1 %1168  ;;  %v1271_v59 = vpop.permute.xlu0 %1270  ;;  %1799 = vmatmul.mubr.bf16.gmra.mrb[44].mxu0 %v1382_v16 }
 0x1be   : > { %2848 = vmatprep.mubr.msk.bf16.mxu0 %vm1292_vm10, %v4804_v38  ;;  %v1388_v14 = vsel %vm1374_vm12, %v1351_v58, %v1169_v30  ;;  %v1046_v52 = vsel %vm3372_vm8, 0, %v4813_v61  ;;  %v979_v41 = vsel %vm3401_vm9, 0, %v949_v0  ;;  %v1047_v61 = vsel %vm3372_vm8, 0, %v1017_v7  ;;  %v4822_v7 = vld [vmem:[#allocation22_spill] sm:$0xff] }
 0x1bf   : > { %1140 = vrot.lane.b32.xlu1 %v4252_v24, %s3142_s16  ;;  %1252 = vrot.lane.b32.xlu0 %v4269_v15, %s3142_s16 }
 0x1c1   : > { %v4275_v53 = vpop.permute.xlu1 %1078  ;;  %v1269_v19 = vpop.permute.xlu0 %1268 }
 0x1c3   : > { %1188 = vrot.lane.b32.xlu1 %v4269_v15, %s3143_s21  ;;  %1288 = vrot.lane.b32.xlu0 %v3947_v43, %s3143_s21 }
 0x1c5   : > { %v1077_v39 = vpop.permute.xlu1 %1076  ;;  %v1202_v4 = vpop.permute.xlu0 %1201  ;;  %2849 = vmatmul.mubr.msk.bf16.vlgmr.msra.gmra.mrb[48].mxu0 %vm1292_vm10, %v4806_v35 }
 0x1c6   : > { %2852 = vmatprep.mubr.msk.bf16.mxu0 %vm1292_vm10, %v4807_v3  ;;  %v1437_v27 = vsel %vm1292_vm10, %v4809_v8, %v1202_v4 }
 0x1c7   : > { %1142 = vrot.lane.b32.xlu1 %v4290_v48, %s3142_s16  ;;  %1221 = vrot.lane.b32.xlu0 %v4290_v48, %s3138_s23 }
 0x1c9   : > { %v1123_v28 = vpop.permute.xlu1 %1122  ;;  %v1235_v18 = vpop.permute.xlu0 %1234 }
 0x1ca   : > { %v1480_v26 = vsel %vm1341_vm11, %v1437_v27, %v1235_v18 }
 0x1cb   : > { %1190 = vrot.lane.b32.xlu1 %v978_v56, %s3143_s21  ;;  %1254 = vrot.lane.b32.xlu0 %v978_v56, %s3142_s16  ;;  %v1516_v20 = vsel %vm1374_vm12, %v1480_v26, %v1269_v19  ;;  %v1316_v26 = vsel %vm1292_vm10, %v4009_v33, %v4275_v53 }
 0x1cc   : > { %1814 = vmatprep.mubr.bf16.mxu1 %v1516_v20 }
 0x1cd   : > { %v1171_v45 = vpop.permute.xlu1 %1170  ;;  %1815 = vmatmul.mubr.bf16.gmra.mrb[4].mxu1 %v1388_v14  ;;  %v1204_v50 = vpop.permute.xlu0 %1203  ;;  %2853 = vmatmul.mubr.msk.bf16.gmra.mrb[52].mxu0 %vm1292_vm10, %v3920_v29  ;;  %v4814_v29 = vld [vmem:[#allocation17_spill] sm:$0xff] }
 0x1ce   : > { %2856 = vmatprep.mubr.msk.bf16.mxu0 %vm1292_vm10, %v3998_v36  ;;  %v1440_v47 = vsel %vm1292_vm10, %v3572_v32, %v1204_v50  ;;  %v1310_v38 = vsel %vm1292_vm10, %v4814_v29, %v4183_v1 }
 0x1cf   : > { %1223 = vrot.lane.b32.xlu0 %v1046_v52, %s3138_s23  ;;  %v1353_v44 = vsel %vm1341_vm11, %v1310_v38, %v1123_v28  ;;  %s2465_s23 = sshll.u32 %s4554_s18, 4  ;;  %s4648_s23 = int_to_ptr.vmem [resolvable:$true] %s2465_s23 }
 0x1d0   : > { %v1391_v32 = vsel %vm1374_vm12, %v1353_v44, %v1171_v45  ;;  %p3064_p1 = scmp.lt.s32.totalorder %s4648_s23, %s3062_s30 }
 0x1d1   : > { %v1125_v16 = vpop.permute.xlu1 %1124  ;;  %v1237_v30 = vpop.permute.xlu0 %1236 }
 0x1d2   : > { %v1482_v36 = vsel %vm1341_vm11, %v1440_v47, %v1237_v30  ;;  %v4817_v30 = vld [vmem:[#allocation26_spill] sm:$0xff] }
 0x1d3   : > { %1256 = vrot.lane.b32.xlu0 %v979_v41, %s3142_s16  ;;  %v1519_v9 = vsel %vm1374_vm12, %v1482_v36, %v1271_v59  ;;  %v4816_v59 = vld [vmem:[#allocation14_spill] sm:$0xff] }
 0x1d4   : > { %1822 = vmatprep.mubr.bf16.mxu1 %v1519_v9 }
 0x1d5   : > { %v1173_v63 = vpop.permute.xlu1 %1172  ;;  %1823 = vmatmul.mubr.bf16.gmra.mrb[8].mxu1 %v1391_v32  ;;  %v1275_v19 = vpop.permute.xlu0 %1274  ;;  %2857 = vmatmul.mubr.msk.bf16.gmra.mrb[56].mxu0 %vm1292_vm10, %v4028_v5 }
 0x1d6   : > { %2860 = vmatprep.mubr.msk.bf16.mxu0 %vm1292_vm10, %v4050_v42  ;;  %v1313_v42 = vsel %vm1292_vm10, %v3972_v12, %v1077_v39 }
 0x1d7   : > { %1290 = vrot.lane.b32.xlu0 %v4815_v55, %s3143_s21  ;;  %v1355_v28 = vsel %vm1341_vm11, %v1313_v42, %v1125_v16  ;;  %s4646_s21 = scalar_lea.hbm %s4708_s7, %s2617_s19 }
 0x1d9   : > { %v1083_v1 = vpop.permute.xlu1 %1082  ;;  %v1273_v4 = vpop.permute.xlu0 %1272 }
 0x1da   : > { %v1322_v29 = vsel %vm1292_vm10, %v4817_v30, %v1083_v1 }
 0x1dd   : > { %v1081_v35 = vpop.permute.xlu1 %1080  ;;  %v1206_v3 = vpop.permute.xlu0 %1205  ;;  %2861 = vmatmul.mubr.msk.bf16.gmra.mrb[60].mxu0 %vm1292_vm10, %v4080_v11  ;;  %v1394_v11 = vsel %vm1374_vm12, %v1355_v28, %v1173_v63 }
 0x1de   : > { %2864 = vmatprep.mubr.msk.bf16.mxu0 %vm1292_vm10, %v4102_v51  ;;  %v1443_v17 = vsel %vm1292_vm10, %v4816_v59, %v1206_v3  ;;  %v4819_v59 = vld [vmem:[#allocation27_spill] sm:$0xff] }
 0x1e1   : > { %v1127_v5 = vpop.permute.xlu1 %1126  ;;  %v1239_v8 = vpop.permute.xlu0 %1238 }
 0x1e2   : > { %v1484_v27 = vsel %vm1341_vm11, %v1443_v17, %v1239_v8  ;;  %v1357_v56 = vsel %vm1341_vm11, %v1316_v26, %v1127_v5 }
 0x1e3   : > { %v1522_v18 = vsel %vm1374_vm12, %v1484_v27, %v1273_v4  ;;  %v4818_v4 = vld [vmem:[#allocation18_spill] sm:$0xff] }
 0x1e4   : > { %1830 = vmatprep.mubr.bf16.mxu1 %v1522_v18 }
 0x1e5   : > { %v1175_v6 = vpop.permute.xlu1 %1174  ;;  %1831 = vmatmul.mubr.bf16.gmra.mrb[12].mxu1 %v1394_v11  ;;  %v1208_v51 = vpop.permute.xlu0 %1207  ;;  %2865 = vmatmul.mubr.msk.bf16.gmra.mrb[64].mxu0 %vm1292_vm10, %v4140_v10  ;;  %v4820_v11 = vld [vmem:[#allocation23_spill] sm:$0xff] }
 0x1e6   : > { %2868 = vmatprep.mubr.msk.bf16.mxu0 %vm1292_vm10, %v4174_v21  ;;  %v1446_v12 = vsel %vm1292_vm10, %v3641_v46, %v1208_v51  ;;  %v1397_v10 = vsel %vm1374_vm12, %v1357_v56, %v1175_v6 }
 0x1e9   : > { %v1129_v39 = vpop.permute.xlu1 %1128  ;;  %v1241_v57 = vpop.permute.xlu0 %1240 }
 0x1ea   : > { %v1486_v62 = vsel %vm1341_vm11, %v1446_v12, %v1241_v57 }
 0x1eb   : > { %v1525_v58 = vsel %vm1374_vm12, %v1486_v62, %v1275_v19 }
 0x1ec   : > { %1838 = vmatprep.mubr.bf16.mxu1 %v1525_v58 }
 0x1ed   : > { %v1177_v20 = vpop.permute.xlu1 %1176  ;;  %1839 = vmatmul.mubr.bf16.gmra.mrb[16].mxu1 %v1397_v10  ;;  %v1279_v21 = vpop.permute.xlu0 %1278  ;;  %2869 = vmatmul.mubr.msk.bf16.gmra.mrb[68].mxu0 %vm1292_vm10, %v4215_v2 }
 0x1ee   : > { %2872 = vmatprep.mubr.msk.bf16.mxu0 %vm1292_vm10, %v4252_v24  ;;  %v1319_v24 = vsel %vm1292_vm10, %v4039_v23, %v1081_v35  ;;  %v3023_v23 = vld [vmem:[%s4706_s5] sm:$0xff]  }
 0x1ef   : > { %2880 = vmatprep.subr.bf16.mxu1 %v3023_v23 }
 0x1f0   : > { %2881 = vmatpush3.bf16.msra.mxu1 %v3023_v23 }
 0x1f1   : > { %v1087_v46 = vpop.permute.xlu1 %1086  ;;  %v1277_v33 = vpop.permute.xlu0 %1276 }
 0x1f5   : > { %v1085_v53 = vpop.permute.xlu1 %1084  ;;  %v1210_v34 = vpop.permute.xlu0 %1209  ;;  %2873 = vmatmul.mubr.msk.bf16.gmra.mrb[72].mxu0 %vm1292_vm10, %v4290_v48  ;;  %v1359_v48 = vsel %vm1341_vm11, %v1319_v24, %v1129_v39  ;;  %v4821_v39 = vld [vmem:[#allocation28_spill] sm:$0xff] }
 0x1f6   : > { %2876 = vmatprep.mubr.msk.bf16.mxu0 %vm1292_vm10, %v1046_v52  ;;  %v1449_v14 = vsel %vm1292_vm10, %v3635_v25, %v1210_v34  ;;  %v1400_v22 = vsel %vm1374_vm12, %v1359_v48, %v1177_v20  ;;  %v1325_v17 = vsel %vm1292_vm10, %v4819_v59, %v1085_v53  ;;  %v1328_v57 = vsel %vm1292_vm10, %v4821_v39, %v1087_v46 }
 0x1f9   : > { %v1131_v45 = vpop.permute.xlu1 %1130  ;;  %v1243_v2 = vpop.permute.xlu0 %1242 }
 0x1fa   : > { %v1488_v50 = vsel %vm1341_vm11, %v1449_v14, %v1243_v2  ;;  %v1361_v36 = vsel %vm1341_vm11, %v1322_v29, %v1131_v45 }
 0x1fb   : > { %v1528_v52 = vsel %vm1374_vm12, %v1488_v50, %v1277_v33 }
 0x1fc   : > { %1846 = vmatprep.mubr.bf16.mxu1 %v1528_v52 }
 0x1fd   : > { %v1179_v0 = vpop.permute.xlu1 %1178  ;;  %1847 = vmatmul.mubr.bf16.gmra.mrb[20].mxu1 %v1400_v22  ;;  %v1212_v25 = vpop.permute.xlu0 %1211  ;;  %2877 = vmatmul.mubr.msk.bf16.gmra.mrb[76].mxu0 %vm1292_vm10, %v1047_v61 }
 0x1fe   : > { %v1452_v37 = vsel %vm1292_vm10, %v3733_v31, %v1212_v25  ;;  %v1403_v44 = vsel %vm1374_vm12, %v1361_v36, %v1179_v0 }
 0x201   : > { %v1133_v47 = vpop.permute.xlu1 %1132  ;;  %v1245_v16 = vpop.permute.xlu0 %1244 }
 0x202   : > { %v1490_v38 = vsel %vm1341_vm11, %v1452_v37, %v1245_v16  ;;  %v1363_v8 = vsel %vm1341_vm11, %v1325_v17, %v1133_v47 }
 0x203   : > { %v1531_v41 = vsel %vm1374_vm12, %v1490_v38, %v1279_v21  ;;  %v3024_v21 = vld [vmem:[%s4706_s5 + $0x8] sm:$0xff]  }
 0x204   : > { %1854 = vmatprep.mubr.bf16.mxu1 %v1531_v41  ;;  %2882 = vmatprep.subr.bf16.mxu1 %v3024_v21 }
 0x205   : > { %v1181_v9 = vpop.permute.xlu1 %1180  ;;  %1855 = vmatmul.mubr.bf16.gmra.mrb[24].mxu1 %v1403_v44  ;;  %v1283_v32 = vpop.permute.xlu0 %1282 }
 0x206   : > { %v1406_v27 = vsel %vm1374_vm12, %v1363_v8, %v1181_v9  ;;  %2883 = vmatpush3.bf16.msra.mxu1 %v3024_v21 }
 0x209   : > { %v1091_v31 = vpop.permute.xlu1 %1090  ;;  %v1281_v63 = vpop.permute.xlu0 %1280 }
 0x20d   : > { %v1089_v19 = vpop.permute.xlu1 %1088  ;;  %v1214_v55 = vpop.permute.xlu0 %1213 }
 0x20e   : > { %v1455_v1 = vsel %vm1292_vm10, %v4818_v4, %v1214_v55  ;;  %v1331_v2 = vsel %vm1292_vm10, %v4157_v54, %v1089_v19  ;;  %v1334_v54 = vsel %vm1292_vm10, %v4193_v60, %v1091_v31 }
 0x211   : > { %v1135_v35 = vpop.permute.xlu1 %1134  ;;  %v1247_v3 = vpop.permute.xlu0 %1246 }
 0x212   : > { %v1492_v5 = vsel %vm1341_vm11, %v1455_v1, %v1247_v3  ;;  %v1365_v62 = vsel %vm1341_vm11, %v1328_v57, %v1135_v35 }
 0x213   : > { %v1534_v42 = vsel %vm1374_vm12, %v1492_v5, %v1281_v63 }
 0x214   : > { %1862 = vmatprep.mubr.bf16.mxu1 %v1534_v42 }
 0x215   : > { %v1183_v28 = vpop.permute.xlu1 %1182  ;;  %1863 = vmatmul.mubr.bf16.gmra.mrb[28].mxu1 %v1406_v27  ;;  %v1216_v18 = vpop.permute.xlu0 %1215 }
 0x216   : > { %v1458_v6 = vsel %vm1292_vm10, %v4820_v11, %v1216_v18  ;;  %v1409_v58 = vsel %vm1374_vm12, %v1365_v62, %v1183_v28 }
 0x219   : > { %v1137_v51 = vpop.permute.xlu1 %1136  ;;  %v1249_v12 = vpop.permute.xlu0 %1248 }
 0x21a   : > { %v1494_v26 = vsel %vm1341_vm11, %v1458_v6, %v1249_v12  ;;  %v1367_v61 = vsel %vm1341_vm11, %v1331_v2, %v1137_v51 }
 0x21b   : > { %v1537_v56 = vsel %vm1374_vm12, %v1494_v26, %v1283_v32 }
 0x21c   : > { %1870 = vmatprep.mubr.bf16.mxu1 %v1537_v56 }
 0x21d   : > { %v1185_v10 = vpop.permute.xlu1 %1184  ;;  %1871 = vmatmul.mubr.bf16.gmra.mrb[32].mxu1 %v1409_v58  ;;  %v1287_v20 = vpop.permute.xlu0 %1286 }
 0x21e   : > { %v1412_v52 = vsel %vm1374_vm12, %v1367_v61, %v1185_v10 }
 0x221   : > { %v1095_v33 = vpop.permute.xlu1 %1094  ;;  %v1285_v53 = vpop.permute.xlu0 %1284 }
 0x225   : > { %v1093_v46 = vpop.permute.xlu1 %1092  ;;  %v1218_v34 = vpop.permute.xlu0 %1217 }
 0x226   : > { %v1461_v14 = vsel %vm1292_vm10, %v4822_v7, %v1218_v34  ;;  %v1337_v60 = vsel %vm1292_vm10, %v4228_v49, %v1093_v46  ;;  %v1340_v49 = vsel %vm1292_vm10, %v4269_v15, %v1095_v33  ;;  %v4455_v7 = vld [vmem:[%s4705_s4] ss:$0 sm:$0xff] }
 0x229   : > { %v1251_v45 = vpop.permute.xlu0 %1250  ;;  %v1139_v24 = vpop.permute.xlu1 %1138 }
 0x22a   : > { %v1496_v50 = vsel %vm1341_vm11, %v1461_v14, %v1251_v45  ;;  %v1369_v47 = vsel %vm1341_vm11, %v1334_v54, %v1139_v24 }
 0x22b   : > { %v1540_v48 = vsel %vm1374_vm12, %v1496_v50, %v1285_v53 }
 0x22c   : > { %1878 = vmatprep.mubr.bf16.mxu1 %v1540_v48 }
 0x22d   : > { %1879 = vmatmul.mubr.bf16.gmra.mrb[36].mxu1 %v1412_v52  ;;  %v1220_v22 = vpop.permute.xlu0 %1219  ;;  %v1187_v0 = vpop.permute.xlu1 %1186 }
 0x22e   : > { %v1464_v25 = vsel %vm1292_vm10, %v3881_v40, %v1220_v22  ;;  %v1415_v30 = vsel %vm1374_vm12, %v1369_v47, %v1187_v0 }
 0x231   : > { %v1253_v23 = vpop.permute.xlu0 %1252  ;;  %v1141_v38 = vpop.permute.xlu1 %1140 }
 0x232   : > { %v1498_v37 = vsel %vm1341_vm11, %v1464_v25, %v1253_v23  ;;  %v1371_v32 = vsel %vm1341_vm11, %v1337_v60, %v1141_v38 }
 0x233   : > { %v1543_v16 = vsel %vm1374_vm12, %v1498_v37, %v1287_v20 }
 0x234   : > { %1886 = vmatprep.mubr.bf16.mxu1 %v1543_v16 }
 0x235   : > { %1887 = vmatmul.mubr.bf16.gmra.mrb[40].mxu1 %v1415_v30  ;;  %v1289_v29 = vpop.permute.xlu0 %1288  ;;  %v1189_v41 = vpop.permute.xlu1 %1188 }
 0x236   : > { %v1418_v63 = vsel %vm1374_vm12, %v1371_v32, %v1189_v41 }
 0x239   : > { %v1222_v36 = vpop.permute.xlu0 %1221  ;;  %v1143_v55 = vpop.permute.xlu1 %1142 }
 0x23a   : > { %v1467_v40 = vsel %vm1292_vm10, %v3878_v13, %v1222_v36  ;;  %v1373_v59 = vsel %vm1341_vm11, %v1340_v49, %v1143_v55 }
 0x23d   : > { %v1255_v44 = vpop.permute.xlu0 %1254  ;;  %v1191_v1 = vpop.permute.xlu1 %1190 }
 0x23e   : > { %v1500_v9 = vsel %vm1341_vm11, %v1467_v40, %v1255_v44  ;;  %v1421_v5 = vsel %vm1374_vm12, %v1373_v59, %v1191_v1 }
 0x23f   : > { %v1546_v31 = vsel %vm1374_vm12, %v1500_v9, %v1289_v29 }
 0x240   : > { %1894 = vmatprep.mubr.bf16.mxu1 %v1546_v31 }
 0x241   : > { %1895 = vmatmul.mubr.bf16.gmra.mrb[44].mxu1 %v1418_v63  ;;  %v1224_v19 = vpop.permute.xlu0 %1223 }
 0x242   : > { %v1470_v13 = vsel %vm1292_vm10, %v3947_v43, %v1224_v19 }
 0x245   : > { %v1257_v4 = vpop.permute.xlu0 %1256 }
 0x246   : > { %v1502_v35 = vsel %vm1341_vm11, %v1470_v13, %v1257_v4 }
 0x249   : > { %v1291_v3 = vpop.permute.xlu0 %1290 }
 0x24a   : > { %v1549_v17 = vsel %vm1374_vm12, %v1502_v35, %v1291_v3 }
 0x24b   : > { %1902 = vmatprep.mubr.bf16.mxu1 %v1549_v17 }
 0x24c   : > { %1903 = vmatmul.mubr.bf16.gmra.mrb[48].mxu1 %v1421_v5 }
 0x274   : > { %v2660_v8 = vpop.f32.mrb[36].mxu0 }
 0x275   : > { %v2661_v42 = vpop.f32.mrb[37].mxu0 }
 0x276   : > { %v2662_v27 = vadd.f32 %v2661_v42, %v2660_v8  ;;  %v2663_v28 = vpop.f32.mrb[38].mxu0 }
 0x277   : > { %v2664_v18 = vpop.f32.mrb[39].mxu0 }
 0x278   : > { %v2665_v43 = vadd.f32 %v2664_v18, %v2663_v28  ;;  %v1785_v2 = vadd.f32 %v2662_v27, %v4455_v7 }
 0x27a   : > { %v1788_v22 = vadd.f32 %v2665_v43, %v4455_v7 }
 0x27c   : > { %v2666_v11 = vpop.f32.mrb[40].mxu0 }
 0x27d   : > { %v2667_v6 = vpop.f32.mrb[41].mxu0 }
 0x27e   : > { %v2668_v15 = vadd.f32 %v2667_v6, %v2666_v11  ;;  %v2669_v51 = vpop.f32.mrb[42].mxu0 }
 0x27f   : > { %v2670_v12 = vpop.f32.mrb[43].mxu0 }
 0x280   : > { %v2671_v39 = vadd.f32 %v2670_v12, %v2669_v51  ;;  %v1793_v14 = vadd.f32 %v2668_v15, %v4455_v7 }
 0x282   : > { %v1796_v61 = vadd.f32 %v2671_v39, %v4455_v7 }
 0x28d   : > { %v2678_v57 = vpop.f32.mrb[0].mxu1 }
 0x28e   : > { %v2679_v26 = vpop.f32.mrb[1].mxu1 }
 0x28f   : > { %v2680_v62 = vadd.f32 %v2679_v26, %v2678_v57  ;;  %v2681_v56 = vpop.f32.mrb[2].mxu1 }
 0x290   : > { %v2672_v58 = vpop.f32.mrb[44].mxu0  ;;  %v2682_v10 = vpop.f32.mrb[3].mxu1 }
 0x291   : > { %v2683_v20 = vadd.f32 %v2682_v10, %v2681_v56  ;;  %v2673_v21 = vpop.f32.mrb[45].mxu0  ;;  %v1809_v29 = vadd.f32 %v2680_v62, %v4455_v7 }
 0x292   : > { %v2674_v33 = vadd.f32 %v2673_v21, %v2672_v58  ;;  %v2675_v53 = vpop.f32.mrb[46].mxu0 }
 0x293   : > { %v2676_v46 = vpop.f32.mrb[47].mxu0  ;;  %v1812_v32 = vadd.f32 %v2683_v20, %v4455_v7 }
 0x294   : > { %v2677_v34 = vadd.f32 %v2676_v46, %v2675_v53  ;;  %v1801_v40 = vadd.f32 %v2674_v33, %v4455_v7 }
 0x296   : > { %v1804_v4 = vadd.f32 %v2677_v34, %v4455_v7 }
 0x298   : > { %v2850_v45 = vpop.f32.mrb[48].mxu0 }
 0x299   : > { %v1954_v24 = vadd.f32 %v2850_v45, %v1793_v14  ;;  %v1945_v50 = vpop.f32.mrb[49].mxu0 }
 0x29a   : > { %v1946_v48 = vadd.f32 %v1945_v50, %v1785_v2  ;;  %v2851_v52 = vpop.f32.mrb[50].mxu0 }
 0x29b   : > { %v1957_v0 = vadd.f32 %v2851_v52, %v1796_v61  ;;  %v1948_v25 = vpop.f32.mrb[51].mxu0  ;;  %v2074_v54 = vmax.f32 %v1954_v24, 0.0 }
 0x29c   : > { %v1949_v23 = vadd.f32 %v1948_v25, %v1788_v22  ;;  %v2072_v47 = vmax.f32 %v1946_v48, 0.0 }
 0x29d   : > { %v2075_v37 = vmax.f32 %v1957_v0, 0.0 }
 0x29e   : > { %v2073_v16 = vmax.f32 %v1949_v23, 0.0 }
 0x29f   : > { %v2105_v30 = vpack.c.bf16 %v2075_v37, %v2074_v54 }
 0x2a0   : > { %v2104_v38 = vpack.c.bf16 %v2073_v16, %v2072_v47  ;;  %v2684_v36 = vpop.f32.mrb[4].mxu1  ;;  %v2854_v41 = vpop.f32.mrb[52].mxu0 }
 0x2a1   : > { %v1970_v44 = vadd.f32 %v2854_v41, %v1809_v29  ;;  %v2685_v60 = vpop.f32.mrb[5].mxu1  ;;  %v1961_v9 = vpop.f32.mrb[53].mxu0 }
 0x2a2   : > { %v2686_v31 = vadd.f32 %v2685_v60, %v2684_v36  ;;  %v1962_v63 = vadd.f32 %v1961_v9, %v1801_v40  ;;  %v2687_v19 = vpop.f32.mrb[6].mxu1  ;;  %v2855_v55 = vpop.f32.mrb[54].mxu0  ;;  %2884 = vmatprep.mubr.msk.bf16.mxu1 %vm1292_vm10, %v2104_v38 }
 0x2a3   : > { %v1973_v1 = vadd.f32 %v2855_v55, %v1812_v32  ;;  %v2688_v13 = vpop.f32.mrb[7].mxu1  ;;  %v1964_v49 = vpop.f32.mrb[55].mxu0  ;;  %2885 = vmatmul.mubr.msk.bf16.vlgmr.msra.gmra.mrb[52].mxu1 %vm1292_vm10, %v2105_v30  ;;  %v2078_v59 = vmax.f32 %v1970_v44, 0.0 }
 0x2a4   : > { %v2689_v35 = vadd.f32 %v2688_v13, %v2687_v19  ;;  %v1965_v3 = vadd.f32 %v1964_v49, %v1804_v4  ;;  %v2076_v5 = vmax.f32 %v1962_v63, 0.0  ;;  %v1817_v43 = vadd.f32 %v2686_v31, %v4455_v7 }
 0x2a5   : > { %v2079_v17 = vmax.f32 %v1973_v1, 0.0 }
 0x2a6   : > { %v2077_v8 = vmax.f32 %v1965_v3, 0.0  ;;  %v1820_v57 = vadd.f32 %v2689_v35, %v4455_v7 }
 0x2a7   : > { %v2107_v42 = vpack.c.bf16 %v2079_v17, %v2078_v59 }
 0x2a8   : > { %v2106_v27 = vpack.c.bf16 %v2077_v8, %v2076_v5  ;;  %v2690_v28 = vpop.f32.mrb[8].mxu1  ;;  %v2858_v18 = vpop.f32.mrb[56].mxu0 }
 0x2a9   : > { %v2691_v11 = vpop.f32.mrb[9].mxu1  ;;  %v1977_v6 = vpop.f32.mrb[57].mxu0 }
 0x2aa   : > { %v2692_v15 = vadd.f32 %v2691_v11, %v2690_v28  ;;  %v1978_v51 = vadd.f32 %v1977_v6, %v1817_v43  ;;  %v2693_v12 = vpop.f32.mrb[10].mxu1  ;;  %v2859_v39 = vpop.f32.mrb[58].mxu0  ;;  %2888 = vmatprep.mubr.msk.bf16.mxu1 %vm1292_vm10, %v2106_v27 }
 0x2ab   : > { %v2694_v26 = vpop.f32.mrb[11].mxu1  ;;  %v1980_v62 = vpop.f32.mrb[59].mxu0  ;;  %2889 = vmatmul.mubr.msk.bf16.gmra.mrb[56].mxu1 %vm1292_vm10, %v2107_v42 }
 0x2ac   : > { %v1825_v56 = vadd.f32 %v2692_v15, %v4455_v7  ;;  %v2695_v58 = vadd.f32 %v2694_v26, %v2693_v12  ;;  %v1981_v10 = vadd.f32 %v1980_v62, %v1820_v57  ;;  %v2080_v21 = vmax.f32 %v1978_v51, 0.0 }
 0x2ae   : > { %v1986_v20 = vadd.f32 %v2858_v18, %v1825_v56  ;;  %v1828_v33 = vadd.f32 %v2695_v58, %v4455_v7  ;;  %v2081_v53 = vmax.f32 %v1981_v10, 0.0 }
 0x2b0   : > { %v1989_v46 = vadd.f32 %v2859_v39, %v1828_v33  ;;  %v2108_v34 = vpack.c.bf16 %v2081_v53, %v2080_v21  ;;  %v2862_v14 = vpop.f32.mrb[60].mxu0  ;;  %v2082_v2 = vmax.f32 %v1986_v20, 0.0 }
 0x2b1   : > { %v1993_v45 = vpop.f32.mrb[61].mxu0 }
 0x2b2   : > { %v2083_v24 = vmax.f32 %v1989_v46, 0.0  ;;  %v2863_v50 = vpop.f32.mrb[62].mxu0  ;;  %2892 = vmatprep.mubr.msk.bf16.mxu1 %vm1292_vm10, %v2108_v34 }
 0x2b3   : > { %v1996_v61 = vpop.f32.mrb[63].mxu0 }
 0x2b4   : > { %v2109_v48 = vpack.c.bf16 %v2083_v24, %v2082_v2 }
 0x2b6   : > { %2893 = vmatmul.mubr.msk.bf16.gmra.mrb[60].mxu1 %vm1292_vm10, %v2109_v48 }
 0x2b8   : > { %v2696_v52 = vpop.f32.mrb[12].mxu1  ;;  %v4475_v22 = vpop.f32.mrb[64].mxu0 }
 0x2b9   : > { %v2697_v0 = vpop.f32.mrb[13].mxu1  ;;  %v2009_v25 = vpop.f32.mrb[65].mxu0 }
 0x2ba   : > { %v2698_v23 = vadd.f32 %v2697_v0, %v2696_v52  ;;  %v2699_v54 = vpop.f32.mrb[14].mxu1  ;;  %v2867_v37 = vpop.f32.mrb[66].mxu0 }
 0x2bb   : > { %v2700_v47 = vpop.f32.mrb[15].mxu1  ;;  %v2012_v16 = vpop.f32.mrb[67].mxu0 }
 0x2bc   : > { %v1833_v30 = vadd.f32 %v2698_v23, %v4455_v7  ;;  %v2701_v29 = vadd.f32 %v2700_v47, %v2699_v54 }
 0x2be   : > { %v1994_v38 = vadd.f32 %v1993_v45, %v1833_v30  ;;  %v1836_v36 = vadd.f32 %v2701_v29, %v4455_v7 }
 0x2c0   : > { %v1997_v41 = vadd.f32 %v1996_v61, %v1836_v36  ;;  %v2702_v40 = vpop.f32.mrb[16].mxu1  ;;  %v4479_v44 = vpop.f32.mrb[68].mxu0  ;;  %v2084_v32 = vmax.f32 %v1994_v38, 0.0 }
 0x2c1   : > { %v2703_v60 = vpop.f32.mrb[17].mxu1  ;;  %v2025_v9 = vpop.f32.mrb[69].mxu0 }
 0x2c2   : > { %v2085_v31 = vmax.f32 %v1997_v41, 0.0  ;;  %v2704_v63 = vadd.f32 %v2703_v60, %v2702_v40  ;;  %v2705_v19 = vpop.f32.mrb[18].mxu1  ;;  %v4481_v55 = vpop.f32.mrb[70].mxu0 }
 0x2c3   : > { %v2706_v4 = vpop.f32.mrb[19].mxu1  ;;  %v2028_v1 = vpop.f32.mrb[71].mxu0 }
 0x2c4   : > { %v2110_v13 = vpack.c.bf16 %v2085_v31, %v2084_v32  ;;  %v1841_v49 = vadd.f32 %v2704_v63, %v4455_v7  ;;  %v2707_v35 = vadd.f32 %v2706_v4, %v2705_v19 }
 0x2c6   : > { %v2002_v3 = vadd.f32 %v2862_v14, %v1841_v49  ;;  %v1844_v59 = vadd.f32 %v2707_v35, %v4455_v7  ;;  %2896 = vmatprep.mubr.msk.bf16.mxu1 %vm1292_vm10, %v2110_v13 }
 0x2c8   : > { %v2005_v17 = vadd.f32 %v2863_v50, %v1844_v59  ;;  %v4486_v5 = vpop.f32.mrb[72].mxu0  ;;  %v2086_v42 = vmax.f32 %v2002_v3, 0.0 }
 0x2c9   : > { %v4488_v8 = vpop.f32.mrb[73].mxu0 }
 0x2ca   : > { %v2087_v27 = vmax.f32 %v2005_v17, 0.0  ;;  %v4490_v28 = vpop.f32.mrb[74].mxu0 }
 0x2cb   : > { %v4492_v18 = vpop.f32.mrb[75].mxu0 }
 0x2cc   : > { %v2111_v43 = vpack.c.bf16 %v2087_v27, %v2086_v42 }
 0x2ce   : > { %2897 = vmatmul.mubr.msk.bf16.gmra.mrb[64].mxu1 %vm1292_vm10, %v2111_v43 }
 0x2d0   : > { %v2708_v11 = vpop.f32.mrb[20].mxu1  ;;  %v4495_v6 = vpop.f32.mrb[76].mxu0 }
 0x2d1   : > { %v2709_v15 = vpop.f32.mrb[21].mxu1  ;;  %v4497_v51 = vpop.f32.mrb[77].mxu0 }
 0x2d2   : > { %v2710_v12 = vadd.f32 %v2709_v15, %v2708_v11  ;;  %v2711_v39 = vpop.f32.mrb[22].mxu1  ;;  %v4499_v57 = vpop.f32.mrb[78].mxu0 }
 0x2d3   : > { %v2712_v26 = vpop.f32.mrb[23].mxu1  ;;  %v4501_v62 = vpop.f32.mrb[79].mxu0 }
 0x2d4   : > { %v1849_v56 = vadd.f32 %v2710_v12, %v4455_v7  ;;  %v2713_v58 = vadd.f32 %v2712_v26, %v2711_v39 }
 0x2d6   : > { %v2010_v10 = vadd.f32 %v2009_v25, %v1849_v56  ;;  %v1852_v20 = vadd.f32 %v2713_v58, %v4455_v7 }
 0x2d8   : > { %v2013_v21 = vadd.f32 %v2012_v16, %v1852_v20  ;;  %v2714_v33 = vpop.f32.mrb[24].mxu1  ;;  %v2088_v46 = vmax.f32 %v2010_v10, 0.0 }
 0x2d9   : > { %v2715_v53 = vpop.f32.mrb[25].mxu1 }
 0x2da   : > { %v2089_v34 = vmax.f32 %v2013_v21, 0.0  ;;  %v2716_v14 = vadd.f32 %v2715_v53, %v2714_v33  ;;  %v2717_v45 = vpop.f32.mrb[26].mxu1 }
 0x2db   : > { %v2718_v2 = vpop.f32.mrb[27].mxu1 }
 0x2dc   : > { %v2112_v24 = vpack.c.bf16 %v2089_v34, %v2088_v46  ;;  %v1857_v50 = vadd.f32 %v2716_v14, %v4455_v7  ;;  %v2719_v61 = vadd.f32 %v2718_v2, %v2717_v45 }
 0x2de   : > { %v2018_v48 = vadd.f32 %v4475_v22, %v1857_v50  ;;  %v1860_v52 = vadd.f32 %v2719_v61, %v4455_v7  ;;  %2900 = vmatprep.mubr.msk.bf16.mxu1 %vm1292_vm10, %v2112_v24 }
 0x2e0   : > { %v2021_v0 = vadd.f32 %v2867_v37, %v1860_v52  ;;  %v2090_v25 = vmax.f32 %v2018_v48, 0.0 }
 0x2e2   : > { %v2091_v23 = vmax.f32 %v2021_v0, 0.0 }
 0x2e4   : > { %v2113_v54 = vpack.c.bf16 %v2091_v23, %v2090_v25 }
 0x2e6   : > { %2901 = vmatmul.mubr.msk.bf16.gmra.mrb[68].mxu1 %vm1292_vm10, %v2113_v54 }
 0x2e8   : > { %v2720_v47 = vpop.f32.mrb[28].mxu1 }
 0x2e9   : > { %v2721_v16 = vpop.f32.mrb[29].mxu1 }
 0x2ea   : > { %v2722_v30 = vadd.f32 %v2721_v16, %v2720_v47  ;;  %v2723_v29 = vpop.f32.mrb[30].mxu1 }
 0x2eb   : > { %v2724_v38 = vpop.f32.mrb[31].mxu1 }
 0x2ec   : > { %v1865_v36 = vadd.f32 %v2722_v30, %v4455_v7  ;;  %v2725_v41 = vadd.f32 %v2724_v38, %v2723_v29 }
 0x2ee   : > { %v2026_v40 = vadd.f32 %v2025_v9, %v1865_v36  ;;  %v1868_v22 = vadd.f32 %v2725_v41, %v4455_v7 }
 0x2f0   : > { %v2029_v60 = vadd.f32 %v2028_v1, %v1868_v22  ;;  %v2726_v32 = vpop.f32.mrb[32].mxu1  ;;  %v2092_v37 = vmax.f32 %v2026_v40, 0.0 }
 0x2f1   : > { %v2727_v31 = vpop.f32.mrb[33].mxu1 }
 0x2f2   : > { %v2093_v63 = vmax.f32 %v2029_v60, 0.0  ;;  %v2728_v19 = vadd.f32 %v2727_v31, %v2726_v32  ;;  %v2729_v4 = vpop.f32.mrb[34].mxu1 }
 0x2f3   : > { %v2730_v13 = vpop.f32.mrb[35].mxu1 }
 0x2f4   : > { %v2114_v49 = vpack.c.bf16 %v2093_v63, %v2092_v37  ;;  %v1873_v35 = vadd.f32 %v2728_v19, %v4455_v7  ;;  %v2731_v3 = vadd.f32 %v2730_v13, %v2729_v4 }
 0x2f6   : > { %v2034_v59 = vadd.f32 %v4479_v44, %v1873_v35  ;;  %v1876_v17 = vadd.f32 %v2731_v3, %v4455_v7  ;;  %2904 = vmatprep.mubr.msk.bf16.mxu1 %vm1292_vm10, %v2114_v49  ;;  %v4542_v49 = vld [vmem:[%s4707_s6] ss:$0 sm:$0xff] }
 0x2f8   : > { %v2037_v9 = vadd.f32 %v4481_v55, %v1876_v17  ;;  %v2094_v1 = vmax.f32 %v2034_v59, 0.0  ;;  %v3025_v59 = vld [vmem:[%s3256_s8 + $0x20] sm:$0xff] }
 0x2fa   : > { %v2095_v42 = vmax.f32 %v2037_v9, 0.0 }
 0x2fc   : > { %v2115_v27 = vpack.c.bf16 %v2095_v42, %v2094_v1  ;;  %v3026_v42 = vld [vmem:[%s3256_s8 + $0x10] sm:$0xff] }
 0x2fe   : > { %2905 = vmatmul.mubr.msk.bf16.gmra.mrb[72].mxu1 %vm1292_vm10, %v2115_v27 }
 0x300   : > { %v2732_v43 = vpop.f32.mrb[36].mxu1 }
 0x301   : > { %v2733_v11 = vpop.f32.mrb[37].mxu1 }
 0x302   : > { %v2734_v15 = vadd.f32 %v2733_v11, %v2732_v43  ;;  %v2735_v12 = vpop.f32.mrb[38].mxu1 }
 0x303   : > { %v2736_v39 = vpop.f32.mrb[39].mxu1 }
 0x304   : > { %v1881_v26 = vadd.f32 %v2734_v15, %v4455_v7  ;;  %v2737_v56 = vadd.f32 %v2736_v39, %v2735_v12  ;;  %v3027_v15 = vld [vmem:[%s3256_s8 + $0x28] sm:$0xff] }
 0x306   : > { %v2042_v44 = vadd.f32 %v4488_v8, %v1881_v26  ;;  %v1884_v58 = vadd.f32 %v2737_v56, %v4455_v7  ;;  %v3028_v26 = vld [vmem:[%s3256_s8 + $0x18] sm:$0xff] }
 0x308   : > { %v2045_v10 = vadd.f32 %v4492_v18, %v1884_v58  ;;  %v2738_v55 = vpop.f32.mrb[40].mxu1  ;;  %v2096_v21 = vmax.f32 %v2042_v44, 0.0 }
 0x309   : > { %v2739_v20 = vpop.f32.mrb[41].mxu1 }
 0x30a   : > { %v2097_v33 = vmax.f32 %v2045_v10, 0.0  ;;  %v2740_v53 = vadd.f32 %v2739_v20, %v2738_v55  ;;  %v2741_v46 = vpop.f32.mrb[42].mxu1 }
 0x30b   : > { %v2742_v34 = vpop.f32.mrb[43].mxu1 }
 0x30c   : > { %v2116_v14 = vpack.c.bf16 %v2097_v33, %v2096_v21  ;;  %v1889_v45 = vadd.f32 %v2740_v53, %v4455_v7  ;;  %v2743_v2 = vadd.f32 %v2742_v34, %v2741_v46  ;;  %v3029_v53 = vld [vmem:[%s3256_s8 + $0x40] sm:$0xff] }
 0x30e   : > { %v2050_v24 = vadd.f32 %v4486_v5, %v1889_v45  ;;  %v1892_v50 = vadd.f32 %v2743_v2, %v4455_v7  ;;  %2908 = vmatprep.mubr.msk.bf16.mxu1 %vm1292_vm10, %v2116_v14  ;;  %v3030_v45 = vld [vmem:[%s3256_s8 + $0x30] sm:$0xff] }
 0x310   : > { %v2053_v8 = vadd.f32 %v4490_v28, %v1892_v50  ;;  %v2098_v18 = vmax.f32 %v2050_v24, 0.0 }
 0x312   : > { %v2099_v61 = vmax.f32 %v2053_v8, 0.0  ;;  %v3031_v8 = vld [vmem:[%s3256_s8 + $0x48] sm:$0xff] }
 0x314   : > { %v2117_v48 = vpack.c.bf16 %v2099_v61, %v2098_v18  ;;  %v2744_v52 = vpop.f32.mrb[44].mxu1 }
 0x315   : > { %v2745_v0 = vpop.f32.mrb[45].mxu1 }
 0x316   : > { %v2746_v25 = vadd.f32 %v2745_v0, %v2744_v52  ;;  %v2747_v23 = vpop.f32.mrb[46].mxu1  ;;  %2909 = vmatmul.mubr.msk.bf16.gmra.mrb[76].mxu1 %vm1292_vm10, %v2117_v48  ;;  %v3032_v48 = vld [vmem:[%s3256_s8 + $0x38] sm:$0xff] }
 0x317   : > { %v2748_v54 = vpop.f32.mrb[47].mxu1 }
 0x318   : > { %v2749_v47 = vadd.f32 %v2748_v54, %v2747_v23  ;;  %v1897_v16 = vadd.f32 %v2746_v25, %v4455_v7 }
 0x31a   : > { %v2058_v5 = vadd.f32 %v4497_v51, %v1897_v16  ;;  %v1900_v30 = vadd.f32 %v2749_v47, %v4455_v7 }
 0x31c   : > { %v2061_v29 = vadd.f32 %v4501_v62, %v1900_v30  ;;  %v2100_v28 = vmax.f32 %v2058_v5, 0.0  ;;  %v3033_v30 = vld [vmem:[%s3256_s8 + $0x60] sm:$0xff] }
 0x31e   : > { %v2101_v38 = vmax.f32 %v2061_v29, 0.0 }
 0x31f   : > { %v2750_v36 = vpop.f32.mrb[48].mxu1 }
 0x320   : > { %v2118_v41 = vpack.c.bf16 %v2101_v38, %v2100_v28  ;;  %v2751_v40 = vpop.f32.mrb[49].mxu1 }
 0x321   : > { %v2752_v22 = vadd.f32 %v2751_v40, %v2750_v36  ;;  %v2753_v60 = vpop.f32.mrb[50].mxu1  ;;  %v3034_v36 = vld [vmem:[%s3256_s8 + $0x50] sm:$0xff] }
 0x322   : > { %v2754_v32 = vpop.f32.mrb[51].mxu1  ;;  %2912 = vmatprep.mubr.msk.bf16.mxu1 %vm1292_vm10, %v2118_v41 }
 0x323   : > { %v1905_v31 = vadd.f32 %v2752_v22, %v4455_v7  ;;  %v2755_v37 = vadd.f32 %v2754_v32, %v2753_v60  ;;  %v3035_v60 = vld [vmem:[%s3256_s8 + $0x68] sm:$0xff] }
 0x325   : > { %v2066_v51 = vadd.f32 %v4495_v6, %v1905_v31  ;;  %v1908_v62 = vadd.f32 %v2755_v37, %v4455_v7  ;;  %v3036_v37 = vld [vmem:[%s3256_s8 + $0x58] sm:$0xff] }
 0x327   : > { %v2069_v63 = vadd.f32 %v4499_v57, %v1908_v62  ;;  %v2102_v19 = vmax.f32 %v2066_v51, 0.0 }
 0x329   : > { %v2103_v4 = vmax.f32 %v2069_v63, 0.0 }
 0x32b   : > { %v2119_v13 = vpack.c.bf16 %v2103_v4, %v2102_v19 }
 0x32d   : > { %2913 = vmatmul.mubr.msk.bf16.gmra.mrb[80].mxu1 %vm1292_vm10, %v2119_v13 }
 0x376   : > { %v2886_v35 = vpop.f32.mrb[52].mxu1 }
 0x377   : > { %v2234_v7 = vadd.f32 %v2886_v35, %v4542_v49  ;;  %v2225_v6 = vpop.f32.mrb[53].mxu1 }
 0x378   : > { %v2226_v57 = vadd.f32 %v4542_v49, %v2225_v6  ;;  %v2887_v3 = vpop.f32.mrb[54].mxu1  ;;  %v3037_v6 = vld [vmem:[%s3256_s8 + $0x80] sm:$0xff] }
 0x379   : > { %v2354_v17 = vadd.f32 %v3025_v59, %v2234_v7  ;;  %v2237_v9 = vadd.f32 %v2887_v3, %v4542_v49  ;;  %v2228_v1 = vpop.f32.mrb[55].mxu1 }
 0x37a   : > { %v2352_v27 = vadd.f32 %v3026_v42, %v2226_v57  ;;  %v2229_v43 = vadd.f32 %v4542_v49, %v2228_v1 }
 0x37b   : > { %v2386_v11 = vmax.f32 %v2354_v17, 0.0  ;;  %v2355_v12 = vadd.f32 %v3027_v15, %v2237_v9  ;;  %v3038_v17 = vld [vmem:[%s3256_s8 + $0x70] sm:$0xff]  ;;  %v3040_v15 = vld [vmem:[%s3256_s8 + $0x78] sm:$0xff] }
 0x37c   : > { %v2384_v39 = vmax.f32 %v2352_v27, 0.0  ;;  %v2353_v56 = vadd.f32 %v3028_v26, %v2229_v43  ;;  %v3039_v27 = vld [vmem:[%s3256_s8 + $0x88] sm:$0xff] }
 0x37d   : > { %2418 = vst [vmem:[%s4554_s18 + $0x10] sm:$0xff] %v2386_v11  ;;  %v2387_v44 = vmax.f32 %v2355_v12, 0.0 }
 0x37e   : > { %2416 = vst [vmem:[%s4554_s18] sm:$0xff] %v2384_v39  ;;  %v2385_v58 = vmax.f32 %v2353_v56, 0.0  ;;  %v2890_v10 = vpop.f32.mrb[56].mxu1 }
 0x37f   : > { %2419 = vst [vmem:[%s4554_s18 + $0x18] sm:$0xff] %v2387_v44  ;;  %v2250_v55 = vadd.f32 %v2890_v10, %v4542_v49  ;;  %v2241_v20 = vpop.f32.mrb[57].mxu1 }
 0x380   : > { %2417 = vst [vmem:[%s4554_s18 + $0x8] sm:$0xff] %v2385_v58  ;;  %v2242_v21 = vadd.f32 %v4542_v49, %v2241_v20  ;;  %v2891_v33 = vpop.f32.mrb[58].mxu1  ;;  %v3041_v20 = vld [vmem:[%s3256_s8 + $0xa0] sm:$0xff] }
 0x381   : > { %v2358_v46 = vadd.f32 %v3029_v53, %v2250_v55  ;;  %v2253_v34 = vadd.f32 %v2891_v33, %v4542_v49  ;;  %v2244_v14 = vpop.f32.mrb[59].mxu1 }
 0x382   : > { %v2356_v2 = vadd.f32 %v3030_v45, %v2242_v21  ;;  %v2245_v24 = vadd.f32 %v4542_v49, %v2244_v14 }
 0x383   : > { %v2390_v50 = vmax.f32 %v2358_v46, 0.0  ;;  %v2359_v18 = vadd.f32 %v3031_v8, %v2253_v34  ;;  %v3042_v46 = vld [vmem:[%s3256_s8 + $0x90] sm:$0xff]  ;;  %v3044_v8 = vld [vmem:[%s3256_s8 + $0x98] sm:$0xff] }
 0x384   : > { %v2388_v61 = vmax.f32 %v2356_v2, 0.0  ;;  %v2357_v52 = vadd.f32 %v3032_v48, %v2245_v24  ;;  %v3043_v2 = vld [vmem:[%s3256_s8 + $0xa8] sm:$0xff] }
 0x385   : > { %2422 = vst [vmem:[%s4554_s18 + $0x30] sm:$0xff] %v2390_v50  ;;  %v2391_v0 = vmax.f32 %v2359_v18, 0.0 }
 0x386   : > { %2420 = vst [vmem:[%s4554_s18 + $0x20] sm:$0xff] %v2388_v61  ;;  %v2389_v25 = vmax.f32 %v2357_v52, 0.0 }
 0x387   : > { %2423 = vst [vmem:[%s4554_s18 + $0x38] sm:$0xff] %v2391_v0 }
 0x388   : > { %2421 = vst [vmem:[%s4554_s18 + $0x28] sm:$0xff] %v2389_v25 }
 0x389   : > { %v2894_v23 = vpop.f32.mrb[60].mxu1 }
 0x38a   : > { %v2266_v54 = vadd.f32 %v2894_v23, %v4542_v49  ;;  %v2257_v47 = vpop.f32.mrb[61].mxu1 }
 0x38b   : > { %v2258_v16 = vadd.f32 %v4542_v49, %v2257_v47  ;;  %v2895_v5 = vpop.f32.mrb[62].mxu1  ;;  %v3045_v47 = vld [vmem:[%s3256_s8 + $0xc0] sm:$0xff] }
 0x38c   : > { %v2362_v29 = vadd.f32 %v3033_v30, %v2266_v54  ;;  %v2269_v28 = vadd.f32 %v2895_v5, %v4542_v49  ;;  %v2260_v38 = vpop.f32.mrb[63].mxu1 }
 0x38d   : > { %v2360_v41 = vadd.f32 %v3034_v36, %v2258_v16  ;;  %v2261_v40 = vadd.f32 %v4542_v49, %v2260_v38 }
 0x38e   : > { %v2394_v22 = vmax.f32 %v2362_v29, 0.0  ;;  %v2363_v32 = vadd.f32 %v3035_v60, %v2269_v28  ;;  %v3046_v29 = vld [vmem:[%s3256_s8 + $0xb0] sm:$0xff]  ;;  %v3048_v60 = vld [vmem:[%s3256_s8 + $0xb8] sm:$0xff] }
 0x38f   : > { %v2392_v31 = vmax.f32 %v2360_v41, 0.0  ;;  %v2361_v51 = vadd.f32 %v3036_v37, %v2261_v40  ;;  %v3047_v41 = vld [vmem:[%s3256_s8 + $0xc8] sm:$0xff] }
 0x390   : > { %2426 = vst [vmem:[%s4554_s18 + $0x50] sm:$0xff] %v2394_v22  ;;  %v2395_v62 = vmax.f32 %v2363_v32, 0.0 }
 0x391   : > { %2424 = vst [vmem:[%s4554_s18 + $0x40] sm:$0xff] %v2392_v31  ;;  %v2393_v63 = vmax.f32 %v2361_v51, 0.0 }
 0x392   : > { %2427 = vst [vmem:[%s4554_s18 + $0x58] sm:$0xff] %v2395_v62 }
 0x393   : > { %2425 = vst [vmem:[%s4554_s18 + $0x48] sm:$0xff] %v2393_v63 }
 0x3a1   : > { %v2898_v19 = vpop.f32.mrb[64].mxu1 }
 0x3a2   : > { %v2282_v4 = vadd.f32 %v2898_v19, %v4542_v49  ;;  %v2273_v13 = vpop.f32.mrb[65].mxu1 }
 0x3a3   : > { %v2274_v35 = vadd.f32 %v4542_v49, %v2273_v13  ;;  %v2899_v7 = vpop.f32.mrb[66].mxu1  ;;  %v3049_v13 = vld [vmem:[%s3256_s8 + $0xe0] sm:$0xff] }
 0x3a4   : > { %v2366_v57 = vadd.f32 %v3037_v6, %v2282_v4  ;;  %v2285_v3 = vadd.f32 %v2899_v7, %v4542_v49  ;;  %v2276_v59 = vpop.f32.mrb[67].mxu1 }
 0x3a5   : > { %v2364_v9 = vadd.f32 %v3038_v17, %v2274_v35  ;;  %v2277_v1 = vadd.f32 %v4542_v49, %v2276_v59 }
 0x3a6   : > { %v2398_v42 = vmax.f32 %v2366_v57, 0.0  ;;  %v2367_v43 = vadd.f32 %v3039_v27, %v2285_v3  ;;  %v3050_v57 = vld [vmem:[%s3256_s8 + $0xd0] sm:$0xff]  ;;  %v3052_v27 = vld [vmem:[%s3256_s8 + $0xd8] sm:$0xff] }
 0x3a7   : > { %v2396_v11 = vmax.f32 %v2364_v9, 0.0  ;;  %v2365_v12 = vadd.f32 %v3040_v15, %v2277_v1  ;;  %v3051_v9 = vld [vmem:[%s3256_s8 + $0xe8] sm:$0xff] }
 0x3a8   : > { %2430 = vst [vmem:[%s4554_s18 + $0x70] sm:$0xff] %v2398_v42  ;;  %v2399_v39 = vmax.f32 %v2367_v43, 0.0 }
 0x3a9   : > { %2428 = vst [vmem:[%s4554_s18 + $0x60] sm:$0xff] %v2396_v11  ;;  %v2397_v26 = vmax.f32 %v2365_v12, 0.0 }
 0x3aa   : > { %2431 = vst [vmem:[%s4554_s18 + $0x78] sm:$0xff] %v2399_v39 }
 0x3ab   : > { %2429 = vst [vmem:[%s4554_s18 + $0x68] sm:$0xff] %v2397_v26 }
 0x3b9   : > { %v2902_v56 = vpop.f32.mrb[68].mxu1 }
 0x3ba   : > { %v2298_v44 = vadd.f32 %v2902_v56, %v4542_v49  ;;  %v2289_v58 = vpop.f32.mrb[69].mxu1 }
 0x3bb   : > { %v2290_v10 = vadd.f32 %v4542_v49, %v2289_v58  ;;  %v2903_v55 = vpop.f32.mrb[70].mxu1  ;;  %v3053_v58 = vld [vmem:[%s3256_s8 + $0x100] sm:$0xff] }
 0x3bc   : > { %v2370_v21 = vadd.f32 %v3041_v20, %v2298_v44  ;;  %v2301_v33 = vadd.f32 %v2903_v55, %v4542_v49  ;;  %v2292_v53 = vpop.f32.mrb[71].mxu1 }
 0x3bd   : > { %v2368_v34 = vadd.f32 %v3042_v46, %v2290_v10  ;;  %v2293_v14 = vadd.f32 %v4542_v49, %v2292_v53 }
 0x3be   : > { %v2402_v45 = vmax.f32 %v2370_v21, 0.0  ;;  %v2371_v24 = vadd.f32 %v3043_v2, %v2301_v33  ;;  %v3054_v21 = vld [vmem:[%s3256_s8 + $0xf0] sm:$0xff]  ;;  %v3056_v2 = vld [vmem:[%s3256_s8 + $0xf8] sm:$0xff] }
 0x3bf   : > { %v2400_v50 = vmax.f32 %v2368_v34, 0.0  ;;  %v2369_v18 = vadd.f32 %v3044_v8, %v2293_v14  ;;  %v3055_v34 = vld [vmem:[%s3256_s8 + $0x108] sm:$0xff]  ;;  %s3057_s8 = scalar_lea.vmem %s4648_s23, 4096 }
 0x3c0   : > { %2434 = vst [vmem:[%s4554_s18 + $0x90] sm:$0xff] %v2402_v45  ;;  %v2403_v61 = vmax.f32 %v2371_v24, 0.0  ;;  %p3058_p12 = scmp.ne.s32.totalorder %s4648_s23, %s3057_s8  ;;  %p3065_p2 = scmp.lt.s32.totalorder %s3063_s12, %s3057_s8 }
 0x3c1   : > { %2432 = vst [vmem:[%s4554_s18 + $0x80] sm:$0xff] %v2400_v50  ;;  %v2401_v48 = vmax.f32 %v2369_v18, 0.0 }
 0x3c2   : > { %2435 = vst [vmem:[%s4554_s18 + $0x98] sm:$0xff] %v2403_v61  ;;  %p3059_p13 = pnand %p3058_p12, %p3227_p4  ;;  %p3066_p3 = por %p3065_p2, %p3064_p1 }
 0x3c3   : > { %2433 = vst [vmem:[%s4554_s18 + $0x88] sm:$0xff] %v2401_v48 }
 0x3c4   : > { %p3060_p0 = pneg %p3059_p13 }
 0x3c6   : > { %p3067_p5 = pnand %p3066_p3, %p3060_p0 }
 0x3d1   : > { %v2906_v52 = vpop.f32.mrb[72].mxu1 }
 0x3d2   : > { %v2314_v0 = vadd.f32 %v2906_v52, %v4542_v49  ;;  %v2305_v25 = vpop.f32.mrb[73].mxu1 }
 0x3d3   : > { %v2306_v23 = vadd.f32 %v4542_v49, %v2305_v25  ;;  %v2907_v54 = vpop.f32.mrb[74].mxu1 }
 0x3d4   : > { %v2374_v16 = vadd.f32 %v3045_v47, %v2314_v0  ;;  %v2317_v5 = vadd.f32 %v2907_v54, %v4542_v49  ;;  %v2308_v30 = vpop.f32.mrb[75].mxu1 }
 0x3d5   : > { %v2372_v28 = vadd.f32 %v3046_v29, %v2306_v23  ;;  %v2309_v38 = vadd.f32 %v4542_v49, %v2308_v30 }
 0x3d6   : > { %v2406_v36 = vmax.f32 %v2374_v16, 0.0  ;;  %v2375_v40 = vadd.f32 %v3047_v41, %v2317_v5 }
 0x3d7   : > { %v2404_v22 = vmax.f32 %v2372_v28, 0.0  ;;  %v2373_v32 = vadd.f32 %v3048_v60, %v2309_v38 }
 0x3d8   : > { %2438 = vst [vmem:[%s4554_s18 + $0xb0] sm:$0xff] %v2406_v36  ;;  %v2407_v31 = vmax.f32 %v2375_v40, 0.0 }
 0x3d9   : > { %2436 = vst [vmem:[%s4554_s18 + $0xa0] sm:$0xff] %v2404_v22  ;;  %v2405_v37 = vmax.f32 %v2373_v32, 0.0 }
 0x3da   : > { %2439 = vst [vmem:[%s4554_s18 + $0xb8] sm:$0xff] %v2407_v31 }
 0x3db   : > { %2437 = vst [vmem:[%s4554_s18 + $0xa8] sm:$0xff] %v2405_v37 }
 0x3e9   : > { %v2910_v51 = vpop.f32.mrb[76].mxu1 }
 0x3ea   : > { %v2330_v62 = vadd.f32 %v2910_v51, %v4542_v49  ;;  %v2321_v63 = vpop.f32.mrb[77].mxu1 }
 0x3eb   : > { %v2322_v19 = vadd.f32 %v4542_v49, %v2321_v63  ;;  %v2911_v4 = vpop.f32.mrb[78].mxu1 }
 0x3ec   : > { %v2378_v35 = vadd.f32 %v3049_v13, %v2330_v62  ;;  %v2333_v7 = vadd.f32 %v2911_v4, %v4542_v49  ;;  %v2324_v6 = vpop.f32.mrb[79].mxu1 }
 0x3ed   : > { %v2376_v3 = vadd.f32 %v3050_v57, %v2322_v19  ;;  %v2325_v59 = vadd.f32 %v4542_v49, %v2324_v6 }
 0x3ee   : > { %v2410_v17 = vmax.f32 %v2378_v35, 0.0  ;;  %v2379_v1 = vadd.f32 %v3051_v9, %v2333_v7 }
 0x3ef   : > { %v2408_v42 = vmax.f32 %v2376_v3, 0.0  ;;  %v2377_v43 = vadd.f32 %v3052_v27, %v2325_v59 }
 0x3f0   : > { %2442 = vst [vmem:[%s4554_s18 + $0xd0] sm:$0xff] %v2410_v17  ;;  %v2411_v11 = vmax.f32 %v2379_v1, 0.0 }
 0x3f1   : > { %2440 = vst [vmem:[%s4554_s18 + $0xc0] sm:$0xff] %v2408_v42  ;;  %v2409_v15 = vmax.f32 %v2377_v43, 0.0 }
 0x3f2   : > { %2443 = vst [vmem:[%s4554_s18 + $0xd8] sm:$0xff] %v2411_v11 }
 0x3f3   : > { %2441 = vst [vmem:[%s4554_s18 + $0xc8] sm:$0xff] %v2409_v15 }
 0x400   : > { %v2914_v12 = vpop.f32.mrb[80].mxu1 }
 0x401   : > { %v2346_v39 = vadd.f32 %v2914_v12, %v4542_v49  ;;  %v2337_v26 = vpop.f32.mrb[81].mxu1 }
 0x402   : > { %v2338_v56 = vadd.f32 %v4542_v49, %v2337_v26  ;;  %v2915_v44 = vpop.f32.mrb[82].mxu1 }
 0x403   : > { %v2382_v10 = vadd.f32 %v3053_v58, %v2346_v39  ;;  %v2349_v55 = vadd.f32 %v2915_v44, %v4542_v49  ;;  %v2340_v20 = vpop.f32.mrb[83].mxu1 }
 0x404   : > { %v2380_v33 = vadd.f32 %v3054_v21, %v2338_v56  ;;  %v2341_v53 = vadd.f32 %v4542_v49, %v2340_v20 }
 0x405   : > { %v2414_v46 = vmax.f32 %v2382_v10, 0.0  ;;  %v2383_v14 = vadd.f32 %v3055_v34, %v2349_v55 }
 0x406   : > { %v2412_v45 = vmax.f32 %v2380_v33, 0.0  ;;  %v2381_v24 = vadd.f32 %v3056_v2, %v2341_v53 }
 0x407   : > { %2446 = vst [vmem:[%s4554_s18 + $0xf0] sm:$0xff] %v2414_v46  ;;  %v2415_v50 = vmax.f32 %v2383_v14, 0.0 }
 0x408   : > { %2444 = vst [vmem:[%s4554_s18 + $0xe0] sm:$0xff] %v2412_v45  ;;  %v2413_v49 = vmax.f32 %v2381_v24, 0.0 }
 0x409   : > { %2447 = vst [vmem:[%s4554_s18 + $0xf8] sm:$0xff] %v2415_v50 }
 0x40a   : > { %2445 = vst [vmem:[%s4554_s18 + $0xe8] sm:$0xff] %v2413_v49 }
 0x40b   : > { %3070 = shalt.err (!%p3067_p5)
}
 0x40c   : > { %s3071_s10 = scalar_lea.hbm %s4646_s21, 4096  ;;  %s3075_s18 = scalar_lea.hbm %s4708_s7, 8192 }
 0x40d   : > { %p3072_p6 = scmp.ne.s32.totalorder %s4646_s21, %s3071_s10  ;;  %p3076_p10 = scmp.lt.u32.totalorder %s4646_s21, %s4708_s7 }
 0x40e   : > { %p3077_p11 = scmp.lt.u32.totalorder %s3075_s18, %s3071_s10  ;;  %p3079_p13 = scmp.lt.u32.totalorder %s3071_s10, %s4646_s21 }
 0x40f   : > { %p3073_p7 = pnand %p3072_p6, %p3227_p4 }
 0x410   : > { %p3078_p12 = por %p3077_p11, %p3076_p10 }
 0x411   : > { %p3074_p9 = pneg %p3073_p7 }
 0x412   : > { %p3080_p0 = por %p3079_p13, %p3078_p12 }
 0x414   : > { %p3081_p1 = pnand %p3080_p0, %p3074_p9 }
 0x416   : > { %3084 = shalt.err (!%p3081_p1)
}
 0x417   : > { %s3145_s20 = smov 128   ;;  %s3146_s8 = smov 8  }
 0x418   : > { %2933 = dma.vmem_to_hbm [thread:$0]  (%p3227_p4), %s4648_s23, 4096, %s4646_s21, %s4655_s27, %s3145_s20, %s3145_s20, %s3146_s8  }
 0x419 PF: > { %p2939_p2 = scmp.ge.s32.totalorder %s3135_s29, 2  ;;  %s2480_s22 = sand.u32 1, %s3115_s24  }
 0x41a   : > { %s2481_s30 = scalar_lea.sflag [#allocation3], %s2480_s22 }
 0x41b   : > { %p2936_p3 = pnand %p2939_p2, %p3234_p8 }
 0x41d   : > { %3110 = dma.done.wait (!%p2936_p3), %s2481_s30, 4096  }
 0x41e   : > { %3112 = vsyncadd (!%p2936_p3), %s2481_s30, 4294963200  ;;  %s20_s29 = sadd.s32 1, %s3135_s29   ;;  %s4823_s24 = smov %s3119_s25 }
 0x41f   : > { %p17_p5 = scmp.ge.s32.totalorder %s20_s29, 4   ;;  %s4824_s25 = smov %s3123_s26 }
 0x420   : > { %s4825_s26 = smov %s3240_s14  ;;  %s4826_s27 = smov %s3131_s28 }
 0x421   : > { %s4827_s28 = smov %s4829_s9  ;;  %19 = sbr.rel (!%p17_p5) target bundleno = 4 (0x4), region = 84 }
 0x428   :  { %2486 = vsyncpa [#allocation3], 1 }
 0x429   :  { %2488 = vsyncpa [#allocation3 + $0x1], 1 }

</bundles_post_ra>
